<compile_context>
chip_gen: v7x
topology: tpu7x:2x2x1
jax: 0.10.0
libtpu: 0.0.40
codegen_flags: <defaults>
</compile_context>

<pallas_src>
import numpy as np
import jax
import jax.numpy as jnp
from jax import lax
from jax.experimental import pallas as pl
from jax.experimental.pallas import tpu as pltpu


def _round_up(x, m):
    return ((x + m - 1) // m) * m


# --------------------------------------------------------------------------
# Kernel
# --------------------------------------------------------------------------
def wgan_generator_kernel(seq_ref,                     # (T, Bp, Din)
                          wih0_ref,                    # (Din, GW)
                          whh0_ref, b0_ref,            # (H, GW), (1, GW)
                          wih1_ref, whh1_ref, b1_ref,  # (H, GW), (H, GW), (1, GW)
                          wfc1_ref, bfc1_ref,          # (H, H2), (1, H2)
                          gamma_ref, beta_ref,         # (1, H2), (1, H2)
                          wfc2_ref, bfc2_ref,          # (H2, OP), (1, OP)
                          out_ref,                     # (Bp, OP)
                          z0_ref):                     # scratch VMEM (T, Bp, GW)
    T, Bp, Din = seq_ref.shape
    H = whh0_ref.shape[0]
    GW = whh0_ref.shape[1]           # >= 4*H, trailing lanes (if any) unused
    f32 = jnp.float32

    # --- Hoisted layer-0 input projection, bias folded in (added once, not T times).
    seq_flat = seq_ref[...].reshape(T * Bp, Din)
    z0_all = jnp.dot(seq_flat, wih0_ref[...], preferred_element_type=f32)
    z0_ref[...] = (z0_all + b0_ref[...]).reshape(T, Bp, GW)

    # --- Hoist loop-invariant weight loads and the layer-1 bias broadcast.
    whh0 = whh0_ref[...]
    wih1 = wih1_ref[...]
    whh1 = whh1_ref[...]
    b1b = jnp.broadcast_to(b1_ref[...], (Bp, GW))

    def gates(z, c):
        # PyTorch gate order i, f, g, o packed contiguously in the first 4*H lanes.
        s = jax.nn.sigmoid(z)                 # one EUP pass over the gate block
        i = s[:, 0:H]
        f = s[:, H:2 * H]
        o = s[:, 3 * H:4 * H]
        g = jnp.tanh(z[:, 2 * H:3 * H])
        c_new = f * c + i * g
        h_new = o * jnp.tanh(c_new)
        return h_new, c_new

    def step(t, carry):
        h0, c0, h1, c1 = carry
        # Layer 0: recurrent matmul only (input projection + bias precomputed).
        z0 = z0_ref[t] + jnp.dot(h0, whh0, preferred_element_type=f32)
        h0, c0 = gates(z0, c0)
        # TODO(synk): inter-layer LSTM dropout (p=0.2) is training-only; eval forward here.
        # Layer 1: split matmuls (no per-step concat temporary).
        z1 = (jnp.dot(h0, wih1, preferred_element_type=f32)
              + jnp.dot(h1, whh1, preferred_element_type=f32) + b1b)
        h1, c1 = gates(z1, c1)
        return h0, c0, h1, c1

    zeros = jnp.zeros((Bp, H), dtype=f32)
    unroll = True if T <= 16 else 8
    _, _, h1_last, _ = lax.fori_loop(0, T, step, (zeros, zeros, zeros, zeros),
                                     unroll=unroll)

    # Head: Linear -> LayerNorm -> LeakyReLU(0.2) -> (Dropout: identity) -> Linear
    y = jnp.dot(h1_last, wfc1_ref[...], preferred_element_type=f32) + bfc1_ref[...]
    mean = jnp.mean(y, axis=-1, keepdims=True)
    var = jnp.mean(jnp.square(y - mean), axis=-1, keepdims=True)
    y = (y - mean) * lax.rsqrt(var + 1e-5)
    y = y * gamma_ref[...] + beta_ref[...]
    y = jnp.where(y > 0, y, 0.2 * y)                          # LeakyReLU(0.2)
    out = jnp.dot(y, wfc2_ref[...], preferred_element_type=f32) + bfc2_ref[...]
    out_ref[...] = out.astype(out_ref.dtype)                  # lane-dense (Bp, OP) store


# --------------------------------------------------------------------------
# Parameter init (PyTorch-equivalent, logical/unpadded shapes)
# --------------------------------------------------------------------------
def init_params(key, input_dim, hidden_dim, output_dim, noise_dim):
    Din = input_dim + noise_dim
    H = hidden_dim
    H2 = hidden_dim // 2
    ks = jax.random.split(key, 10)
    k_lstm = 1.0 / float(np.sqrt(H))

    def u(k, shape, bound):
        return jax.random.uniform(k, shape, jnp.float32, -bound, bound)

    def xavier(k, fan_in, fan_out):
        limit = float(np.sqrt(6.0 / (fan_in + fan_out)))
        return jax.random.uniform(k, (fan_in, fan_out), jnp.float32, -limit, limit)

    return dict(
        # LSTM layer 0 (weights stored transposed: (in, 4H)); biases b_ih + b_hh fused
        wih0=u(ks[0], (Din, 4 * H), k_lstm),
        whh0=u(ks[1], (H, 4 * H), k_lstm),
        b0=u(ks[2], (1, 4 * H), k_lstm) + u(ks[3], (1, 4 * H), k_lstm),
        # LSTM layer 1
        wih1=u(ks[4], (H, 4 * H), k_lstm),
        whh1=u(ks[5], (H, 4 * H), k_lstm),
        b1=u(ks[6], (1, 4 * H), k_lstm) + u(ks[7], (1, 4 * H), k_lstm),
        # output_net: Linear(H, H//2) xavier_uniform, bias 0
        wfc1=xavier(ks[8], H, H2),
        bfc1=jnp.zeros((1, H2), jnp.float32),
        # LayerNorm(H//2) defaults
        gamma=jnp.ones((1, H2), jnp.float32),
        beta=jnp.zeros((1, H2), jnp.float32),
        # Linear(H//2, output_dim) xavier_uniform, bias 0
        wfc2=xavier(ks[9], H2, output_dim),
        bfc2=jnp.zeros((1, output_dim), jnp.float32),
    )


# --------------------------------------------------------------------------
# Packing: gates stay contiguous; only the total gate-block / output widths
# are padded (trailing, unused lanes) when they are not 128-lane multiples.
# --------------------------------------------------------------------------
def pack_params(params, lane=128):
    H = params["whh0"].shape[0]
    H2 = params["wfc1"].shape[1]
    O = params["wfc2"].shape[1]
    GW = _round_up(4 * H, lane)     # gate block width (== 4*H when H=32)
    OP = _round_up(O, lane)         # lane-dense output store width

    def pad_cols(w, width):
        if w.shape[-1] == width:
            return w
        out = jnp.zeros(w.shape[:-1] + (width,), w.dtype)
        return out.at[..., : w.shape[-1]].set(w)

    return dict(
        wih0=pad_cols(params["wih0"], GW),
        whh0=pad_cols(params["whh0"], GW),
        b0=pad_cols(params["b0"], GW),
        wih1=pad_cols(params["wih1"], GW),
        whh1=pad_cols(params["whh1"], GW),
        b1=pad_cols(params["b1"], GW),
        wfc1=params["wfc1"], bfc1=params["bfc1"],
        gamma=params["gamma"], beta=params["beta"],
        wfc2=pad_cols(params["wfc2"], OP),
        bfc2=pad_cols(params["bfc2"], OP),
        H=H, GW=GW, H2=H2, O=O, OP=OP)


# --------------------------------------------------------------------------
# Host wrapper
# --------------------------------------------------------------------------
def wgan_generator_forward(x, noise, packed, sequence_length):
    # x: (B, input_dim) or (B, T, input_dim); noise likewise.
    if x.ndim == 2:
        x = jnp.repeat(x[:, None, :], sequence_length, axis=1)
        noise = jnp.repeat(noise[:, None, :], sequence_length, axis=1)
    combined = jnp.concatenate([x, noise], axis=-1).astype(jnp.float32)  # (B, T, Din)
    B, T, Din = combined.shape
    seq = jnp.transpose(combined, (1, 0, 2))                             # (T, B, Din)

    # Carry the full batch; pad only to the f32 sublane minimum (8).
    Bp = _round_up(max(B, 8), 8)
    if Bp != B:
        seq = jnp.pad(seq, ((0, 0), (0, Bp - B), (0, 0)))

    H, GW, H2, O, OP = packed["H"], packed["GW"], packed["H2"], packed["O"], packed["OP"]
    G4 = 4 * H

    args = (seq,
            packed["wih0"], packed["whh0"], packed["b0"],
            packed["wih1"], packed["whh1"], packed["b1"],
            packed["wfc1"], packed["bfc1"],
            packed["gamma"], packed["beta"],
            packed["wfc2"], packed["bfc2"])

    # Cost estimate from logical (unpadded) widths.
    flops = int(2 * T * Bp * Din * G4            # hoisted input projection
                + 2 * T * Bp * H * G4            # layer-0 recurrent matmul
                + 2 * T * Bp * 2 * H * G4        # layer-1 split matmuls
                + 2 * Bp * H * H2 + 2 * Bp * H2 * O)
    transcendentals = int(T * Bp * 2 * (G4 + 2 * H) + Bp * H2)
    bytes_accessed = int(sum(int(a.size) * a.dtype.itemsize for a in args)
                         + Bp * O * 4)

    # VMEM budget: scratch + double-buffered args/output, clamped to safe bounds.
    scratch_bytes = T * Bp * GW * 4
    arg_bytes = sum(int(a.size) * a.dtype.itemsize for a in args)
    vmem_limit = int(min(max(scratch_bytes + 2 * (arg_bytes + Bp * OP * 4) + (4 << 20),
                             16 << 20), 64 << 20))

    vmem = pl.BlockSpec(memory_space=pltpu.MemorySpace.VMEM)
    # TODO(synk): for realistic B, add a batch grid axis with
    # dimension_semantics=("parallel",) (uses v7x's 2nd TC) and tile T via a
    # BlockSpec on seq so the z0 scratch stays bounded on v7x's 64 MiB VMEM.
    out = pl.pallas_call(
        wgan_generator_kernel,
        out_shape=jax.ShapeDtypeStruct((Bp, OP), jnp.float32),
        in_specs=[vmem] * len(args),
        out_specs=vmem,
        scratch_shapes=[pltpu.VMEM((T, Bp, GW), jnp.float32)],
        compiler_params=pltpu.CompilerParams(vmem_limit_bytes=vmem_limit),
        cost_estimate=pl.CostEstimate(flops=flops,
                                      transcendentals=transcendentals,
                                      bytes_accessed=bytes_accessed),
    )(*args)
    return out[:B, :O]


# --------------------------------------------------------------------------
# Pure-JAX reference (eval-mode PyTorch semantics) for correctness check
# --------------------------------------------------------------------------
def reference_forward(x, noise, params, sequence_length):
    if x.ndim == 2:
        x = jnp.repeat(x[:, None, :], sequence_length, axis=1)
        noise = jnp.repeat(noise[:, None, :], sequence_length, axis=1)
    combined = jnp.concatenate([x, noise], axis=-1).astype(jnp.float32)  # (B, T, Din)
    B, T, _ = combined.shape
    H = params["whh0"].shape[0]

    def cell(x_t, h, c, wih, whh, b):
        z = x_t @ wih + h @ whh + b
        i = jax.nn.sigmoid(z[:, 0:H])
        f = jax.nn.sigmoid(z[:, H:2 * H])
        g = jnp.tanh(z[:, 2 * H:3 * H])
        o = jax.nn.sigmoid(z[:, 3 * H:4 * H])
        c = f * c + i * g
        h = o * jnp.tanh(c)
        return h, c

    h0 = c0 = h1 = c1 = jnp.zeros((B, H), jnp.float32)
    for t in range(T):
        h0, c0 = cell(combined[:, t], h0, c0, params["wih0"], params["whh0"], params["b0"])
        h1, c1 = cell(h0, h1, c1, params["wih1"], params["whh1"], params["b1"])

    y = h1 @ params["wfc1"] + params["bfc1"]
    mean = y.mean(-1, keepdims=True)
    var = ((y - mean) ** 2).mean(-1, keepdims=True)
    y = (y - mean) * lax.rsqrt(var + 1e-5)
    y = y * params["gamma"] + params["beta"]
    y = jnp.where(y > 0, y, 0.2 * y)
    return y @ params["wfc2"] + params["bfc2"]


if __name__ == "__main__":
    # Small, module-consistent shapes (4*hidden_dim = 128 -> zero gate padding)
    batch = 4
    input_dim = 8
    hidden_dim = 32
    output_dim = 1
    noise_dim = 8
    sequence_length = 8

    key = jax.random.PRNGKey(0)
    k_params, k_x, k_n = jax.random.split(key, 3)

    params = init_params(k_params, input_dim, hidden_dim, output_dim, noise_dim)
    packed = pack_params(params)

    x = jax.random.normal(k_x, (batch, input_dim), jnp.float32)       # 2-D path -> repeated over T
    noise = jax.random.normal(k_n, (batch, noise_dim), jnp.float32)

    out = wgan_generator_forward(x, noise, packed, sequence_length)
    out = jax.block_until_ready(out)
    assert out.shape == (batch, output_dim)

    ref = jax.block_until_ready(reference_forward(x, noise, params, sequence_length))
    max_diff = float(np.max(np.abs(np.asarray(out) - np.asarray(ref))))
    assert np.allclose(np.asarray(out), np.asarray(ref), rtol=1e-3, atol=1e-3), (
        "max abs diff:", max_diff)

    print("KERNEL_OK")
</pallas_src>

<mosaic_0001>
module attributes {stable_mosaic.version = 11 : i64} {
  func.func @wgan_generator_kernel(%arg0: memref<8x8x16xf32, #tpu.memory_space<vmem>>, %arg1: memref<16x128xf32, #tpu.memory_space<vmem>>, %arg2: memref<32x128xf32, #tpu.memory_space<vmem>>, %arg3: memref<1x128xf32, #tpu.memory_space<vmem>>, %arg4: memref<32x128xf32, #tpu.memory_space<vmem>>, %arg5: memref<32x128xf32, #tpu.memory_space<vmem>>, %arg6: memref<1x128xf32, #tpu.memory_space<vmem>>, %arg7: memref<32x16xf32, #tpu.memory_space<vmem>>, %arg8: memref<1x16xf32, #tpu.memory_space<vmem>>, %arg9: memref<1x16xf32, #tpu.memory_space<vmem>>, %arg10: memref<1x16xf32, #tpu.memory_space<vmem>>, %arg11: memref<16x128xf32, #tpu.memory_space<vmem>>, %arg12: memref<1x128xf32, #tpu.memory_space<vmem>>, %arg13: memref<8x128xf32, #tpu.memory_space<vmem>>, %arg14: memref<8x8x128xf32, #tpu.memory_space<vmem>>) attributes {dimension_semantics = [], scalar_prefetch = 0 : i64, scratch_operands = 1 : i64, tpu.core_type = #tpu.core_type<tc>} {
    %c0 = arith.constant 0 : index
    %c0_0 = arith.constant 0 : index
    %c0_1 = arith.constant 0 : index
    %0 = vector.load %arg0[%c0, %c0_0, %c0_1] : memref<8x8x16xf32, #tpu.memory_space<vmem>>, vector<8x8x16xf32>
    %1 = vector.shape_cast %0 : vector<8x8x16xf32> to vector<64x16xf32>
    %c0_2 = arith.constant 0 : index
    %c0_3 = arith.constant 0 : index
    %2 = vector.load %arg1[%c0_2, %c0_3] : memref<16x128xf32, #tpu.memory_space<vmem>>, vector<16x128xf32>
    %cst = arith.constant dense<0.000000e+00> : vector<64x128xf32>
    %3 = tpu.matmul %1, %2, %cst {dimension_numbers = #tpu.dot_dimension_numbers<[1], [0], [0], [1], [0, 0, 1, 1], [], []>} : vector<64x16xf32>, vector<16x128xf32>, vector<64x128xf32> -> vector<64x128xf32>
    %c0_4 = arith.constant 0 : index
    %c0_5 = arith.constant 0 : index
    %4 = vector.load %arg3[%c0_4, %c0_5] : memref<1x128xf32, #tpu.memory_space<vmem>>, vector<1x128xf32>
    %5 = vector.broadcast %4 : vector<1x128xf32> to vector<64x128xf32>
    %6 = arith.addf %3, %5 : vector<64x128xf32>
    %7 = vector.shape_cast %6 : vector<64x128xf32> to vector<8x8x128xf32>
    %c0_6 = arith.constant 0 : index
    %c0_7 = arith.constant 0 : index
    %c0_8 = arith.constant 0 : index
    %8 = vector.load %arg14[%c0_6, %c0_7, %c0_8] : memref<8x8x128xf32, #tpu.memory_space<vmem>>, vector<8x8x128xf32>
    tpu.vector_store %arg14[%c0_6, %c0_7, %c0_8], %7 {strides = array<i32>} : memref<8x8x128xf32, #tpu.memory_space<vmem>>, vector<8x8x128xf32>,
    %c0_9 = arith.constant 0 : index
    %c0_10 = arith.constant 0 : index
    %9 = vector.load %arg2[%c0_9, %c0_10] : memref<32x128xf32, #tpu.memory_space<vmem>>, vector<32x128xf32>
    %c0_11 = arith.constant 0 : index
    %c0_12 = arith.constant 0 : index
    %10 = vector.load %arg4[%c0_11, %c0_12] : memref<32x128xf32, #tpu.memory_space<vmem>>, vector<32x128xf32>
    %c0_13 = arith.constant 0 : index
    %c0_14 = arith.constant 0 : index
    %11 = vector.load %arg5[%c0_13, %c0_14] : memref<32x128xf32, #tpu.memory_space<vmem>>, vector<32x128xf32>
    %c0_15 = arith.constant 0 : index
    %c0_16 = arith.constant 0 : index
    %12 = vector.load %arg6[%c0_15, %c0_16] : memref<1x128xf32, #tpu.memory_space<vmem>>, vector<1x128xf32>
    %13 = vector.shape_cast %12 : vector<1x128xf32> to vector<1x128xf32>
    %14 = vector.broadcast %13 : vector<1x128xf32> to vector<8x128xf32>
    %cst_17 = arith.constant 0.000000e+00 : f32
    %15 = vector.broadcast %cst_17 : f32 to vector<8x32xf32>
    %c0_i32 = arith.constant 0 : i32
    %16 = arith.index_cast %c0_i32 : i32 to index
    %c0_18 = arith.constant 0 : index
    %c0_19 = arith.constant 0 : index
    %17 = vector.load %arg14[%16, %c0_18, %c0_19] : memref<8x8x128xf32, #tpu.memory_space<vmem>>, vector<1x8x128xf32>
    %18 = vector.shape_cast %17 : vector<1x8x128xf32> to vector<8x128xf32>
    %cst_20 = arith.constant dense<0.000000e+00> : vector<8x128xf32>
    %19 = tpu.matmul %15, %9, %cst_20 {dimension_numbers = #tpu.dot_dimension_numbers<[1], [0], [0], [1], [0, 0, 1, 1], [], []>} : vector<8x32xf32>, vector<32x128xf32>, vector<8x128xf32> -> vector<8x128xf32>
    %20 = arith.addf %18, %19 : vector<8x128xf32>
    %21 = arith.negf %20 : vector<8x128xf32>
    %22 = math.exp %21 : vector<8x128xf32>
    %cst_21 = arith.constant 1.000000e+00 : f32
    %23 = vector.broadcast %cst_21 : f32 to vector<8x128xf32>
    %24 = arith.addf %23, %22 : vector<8x128xf32>
    %25 = arith.divf %23, %24 : vector<8x128xf32>
    %26 = vector.extract_strided_slice %25 {offsets = [0, 0], sizes = [8, 32], strides = [1, 1]} : vector<8x128xf32> to vector<8x32xf32>
    %27 = vector.extract_strided_slice %25 {offsets = [0, 32], sizes = [8, 32], strides = [1, 1]} : vector<8x128xf32> to vector<8x32xf32>
    %28 = vector.extract_strided_slice %25 {offsets = [0, 96], sizes = [8, 32], strides = [1, 1]} : vector<8x128xf32> to vector<8x32xf32>
    %29 = vector.extract_strided_slice %20 {offsets = [0, 64], sizes = [8, 32], strides = [1, 1]} : vector<8x128xf32> to vector<8x32xf32>
    %30 = math.tanh %29 : vector<8x32xf32>
    %31 = arith.mulf %27, %15 : vector<8x32xf32>
    %32 = arith.mulf %26, %30 : vector<8x32xf32>
    %33 = arith.addf %31, %32 : vector<8x32xf32>
    %34 = math.tanh %33 : vector<8x32xf32>
    %35 = arith.mulf %28, %34 : vector<8x32xf32>
    %cst_22 = arith.constant dense<0.000000e+00> : vector<8x128xf32>
    %36 = tpu.matmul %35, %10, %cst_22 {dimension_numbers = #tpu.dot_dimension_numbers<[1], [0], [0], [1], [0, 0, 1, 1], [], []>} : vector<8x32xf32>, vector<32x128xf32>, vector<8x128xf32> -> vector<8x128xf32>
    %cst_23 = arith.constant dense<0.000000e+00> : vector<8x128xf32>
    %37 = tpu.matmul %15, %11, %cst_23 {dimension_numbers = #tpu.dot_dimension_numbers<[1], [0], [0], [1], [0, 0, 1, 1], [], []>} : vector<8x32xf32>, vector<32x128xf32>, vector<8x128xf32> -> vector<8x128xf32>
    %38 = arith.addf %36, %37 : vector<8x128xf32>
    %39 = arith.addf %38, %14 : vector<8x128xf32>
    %40 = arith.negf %39 : vector<8x128xf32>
    %41 = math.exp %40 : vector<8x128xf32>
    %cst_24 = arith.constant 1.000000e+00 : f32
    %42 = vector.broadcast %cst_24 : f32 to vector<8x128xf32>
    %43 = arith.addf %42, %41 : vector<8x128xf32>
    %44 = arith.divf %42, %43 : vector<8x128xf32>
    %45 = vector.extract_strided_slice %44 {offsets = [0, 0], sizes = [8, 32], strides = [1, 1]} : vector<8x128xf32> to vector<8x32xf32>
    %46 = vector.extract_strided_slice %44 {offsets = [0, 32], sizes = [8, 32], strides = [1, 1]} : vector<8x128xf32> to vector<8x32xf32>
    %47 = vector.extract_strided_slice %44 {offsets = [0, 96], sizes = [8, 32], strides = [1, 1]} : vector<8x128xf32> to vector<8x32xf32>
    %48 = vector.extract_strided_slice %39 {offsets = [0, 64], sizes = [8, 32], strides = [1, 1]} : vector<8x128xf32> to vector<8x32xf32>
    %49 = math.tanh %48 : vector<8x32xf32>
    %50 = arith.mulf %46, %15 : vector<8x32xf32>
    %51 = arith.mulf %45, %49 : vector<8x32xf32>
    %52 = arith.addf %50, %51 : vector<8x32xf32>
    %53 = math.tanh %52 : vector<8x32xf32>
    %54 = arith.mulf %47, %53 : vector<8x32xf32>
    %c1_i32 = arith.constant 1 : i32
    %55 = arith.index_cast %c1_i32 : i32 to index
    %c0_25 = arith.constant 0 : index
    %c0_26 = arith.constant 0 : index
    %56 = vector.load %arg14[%55, %c0_25, %c0_26] : memref<8x8x128xf32, #tpu.memory_space<vmem>>, vector<1x8x128xf32>
    %57 = vector.shape_cast %56 : vector<1x8x128xf32> to vector<8x128xf32>
    %cst_27 = arith.constant dense<0.000000e+00> : vector<8x128xf32>
    %58 = tpu.matmul %35, %9, %cst_27 {dimension_numbers = #tpu.dot_dimension_numbers<[1], [0], [0], [1], [0, 0, 1, 1], [], []>} : vector<8x32xf32>, vector<32x128xf32>, vector<8x128xf32> -> vector<8x128xf32>
    %59 = arith.addf %57, %58 : vector<8x128xf32>
    %60 = arith.negf %59 : vector<8x128xf32>
    %61 = math.exp %60 : vector<8x128xf32>
    %cst_28 = arith.constant 1.000000e+00 : f32
    %62 = vector.broadcast %cst_28 : f32 to vector<8x128xf32>
    %63 = arith.addf %62, %61 : vector<8x128xf32>
    %64 = arith.divf %62, %63 : vector<8x128xf32>
    %65 = vector.extract_strided_slice %64 {offsets = [0, 0], sizes = [8, 32], strides = [1, 1]} : vector<8x128xf32> to vector<8x32xf32>
    %66 = vector.extract_strided_slice %64 {offsets = [0, 32], sizes = [8, 32], strides = [1, 1]} : vector<8x128xf32> to vector<8x32xf32>
    %67 = vector.extract_strided_slice %64 {offsets = [0, 96], sizes = [8, 32], strides = [1, 1]} : vector<8x128xf32> to vector<8x32xf32>
    %68 = vector.extract_strided_slice %59 {offsets = [0, 64], sizes = [8, 32], strides = [1, 1]} : vector<8x128xf32> to vector<8x32xf32>
    %69 = math.tanh %68 : vector<8x32xf32>
    %70 = arith.mulf %66, %33 : vector<8x32xf32>
    %71 = arith.mulf %65, %69 : vector<8x32xf32>
    %72 = arith.addf %70, %71 : vector<8x32xf32>
    %73 = math.tanh %72 : vector<8x32xf32>
    %74 = arith.mulf %67, %73 : vector<8x32xf32>
    %cst_29 = arith.constant dense<0.000000e+00> : vector<8x128xf32>
    %75 = tpu.matmul %74, %10, %cst_29 {dimension_numbers = #tpu.dot_dimension_numbers<[1], [0], [0], [1], [0, 0, 1, 1], [], []>} : vector<8x32xf32>, vector<32x128xf32>, vector<8x128xf32> -> vector<8x128xf32>
    %cst_30 = arith.constant dense<0.000000e+00> : vector<8x128xf32>
    %76 = tpu.matmul %54, %11, %cst_30 {dimension_numbers = #tpu.dot_dimension_numbers<[1], [0], [0], [1], [0, 0, 1, 1], [], []>} : vector<8x32xf32>, vector<32x128xf32>, vector<8x128xf32> -> vector<8x128xf32>
    %77 = arith.addf %75, %76 : vector<8x128xf32>
    %78 = arith.addf %77, %14 : vector<8x128xf32>
    %79 = arith.negf %78 : vector<8x128xf32>
    %80 = math.exp %79 : vector<8x128xf32>
    %cst_31 = arith.constant 1.000000e+00 : f32
    %81 = vector.broadcast %cst_31 : f32 to vector<8x128xf32>
    %82 = arith.addf %81, %80 : vector<8x128xf32>
    %83 = arith.divf %81, %82 : vector<8x128xf32>
    %84 = vector.extract_strided_slice %83 {offsets = [0, 0], sizes = [8, 32], strides = [1, 1]} : vector<8x128xf32> to vector<8x32xf32>
    %85 = vector.extract_strided_slice %83 {offsets = [0, 32], sizes = [8, 32], strides = [1, 1]} : vector<8x128xf32> to vector<8x32xf32>
    %86 = vector.extract_strided_slice %83 {offsets = [0, 96], sizes = [8, 32], strides = [1, 1]} : vector<8x128xf32> to vector<8x32xf32>
    %87 = vector.extract_strided_slice %78 {offsets = [0, 64], sizes = [8, 32], strides = [1, 1]} : vector<8x128xf32> to vector<8x32xf32>
    %88 = math.tanh %87 : vector<8x32xf32>
    %89 = arith.mulf %85, %52 : vector<8x32xf32>
    %90 = arith.mulf %84, %88 : vector<8x32xf32>
    %91 = arith.addf %89, %90 : vector<8x32xf32>
    %92 = math.tanh %91 : vector<8x32xf32>
    %93 = arith.mulf %86, %92 : vector<8x32xf32>
    %c2_i32 = arith.constant 2 : i32
    %94 = arith.index_cast %c2_i32 : i32 to index
    %c0_32 = arith.constant 0 : index
    %c0_33 = arith.constant 0 : index
    %95 = vector.load %arg14[%94, %c0_32, %c0_33] : memref<8x8x128xf32, #tpu.memory_space<vmem>>, vector<1x8x128xf32>
    %96 = vector.shape_cast %95 : vector<1x8x128xf32> to vector<8x128xf32>
    %cst_34 = arith.constant dense<0.000000e+00> : vector<8x128xf32>
    %97 = tpu.matmul %74, %9, %cst_34 {dimension_numbers = #tpu.dot_dimension_numbers<[1], [0], [0], [1], [0, 0, 1, 1], [], []>} : vector<8x32xf32>, vector<32x128xf32>, vector<8x128xf32> -> vector<8x128xf32>
    %98 = arith.addf %96, %97 : vector<8x128xf32>
    %99 = arith.negf %98 : vector<8x128xf32>
    %100 = math.exp %99 : vector<8x128xf32>
    %cst_35 = arith.constant 1.000000e+00 : f32
    %101 = vector.broadcast %cst_35 : f32 to vector<8x128xf32>
    %102 = arith.addf %101, %100 : vector<8x128xf32>
    %103 = arith.divf %101, %102 : vector<8x128xf32>
    %104 = vector.extract_strided_slice %103 {offsets = [0, 0], sizes = [8, 32], strides = [1, 1]} : vector<8x128xf32> to vector<8x32xf32>
    %105 = vector.extract_strided_slice %103 {offsets = [0, 32], sizes = [8, 32], strides = [1, 1]} : vector<8x128xf32> to vector<8x32xf32>
    %106 = vector.extract_strided_slice %103 {offsets = [0, 96], sizes = [8, 32], strides = [1, 1]} : vector<8x128xf32> to vector<8x32xf32>
    %107 = vector.extract_strided_slice %98 {offsets = [0, 64], sizes = [8, 32], strides = [1, 1]} : vector<8x128xf32> to vector<8x32xf32>
    %108 = math.tanh %107 : vector<8x32xf32>
    %109 = arith.mulf %105, %72 : vector<8x32xf32>
    %110 = arith.mulf %104, %108 : vector<8x32xf32>
    %111 = arith.addf %109, %110 : vector<8x32xf32>
    %112 = math.tanh %111 : vector<8x32xf32>
    %113 = arith.mulf %106, %112 : vector<8x32xf32>
    %cst_36 = arith.constant dense<0.000000e+00> : vector<8x128xf32>
    %114 = tpu.matmul %113, %10, %cst_36 {dimension_numbers = #tpu.dot_dimension_numbers<[1], [0], [0], [1], [0, 0, 1, 1], [], []>} : vector<8x32xf32>, vector<32x128xf32>, vector<8x128xf32> -> vector<8x128xf32>
    %cst_37 = arith.constant dense<0.000000e+00> : vector<8x128xf32>
    %115 = tpu.matmul %93, %11, %cst_37 {dimension_numbers = #tpu.dot_dimension_numbers<[1], [0], [0], [1], [0, 0, 1, 1], [], []>} : vector<8x32xf32>, vector<32x128xf32>, vector<8x128xf32> -> vector<8x128xf32>
    %116 = arith.addf %114, %115 : vector<8x128xf32>
    %117 = arith.addf %116, %14 : vector<8x128xf32>
    %118 = arith.negf %117 : vector<8x128xf32>
    %119 = math.exp %118 : vector<8x128xf32>
    %cst_38 = arith.constant 1.000000e+00 : f32
    %120 = vector.broadcast %cst_38 : f32 to vector<8x128xf32>
    %121 = arith.addf %120, %119 : vector<8x128xf32>
    %122 = arith.divf %120, %121 : vector<8x128xf32>
    %123 = vector.extract_strided_slice %122 {offsets = [0, 0], sizes = [8, 32], strides = [1, 1]} : vector<8x128xf32> to vector<8x32xf32>
    %124 = vector.extract_strided_slice %122 {offsets = [0, 32], sizes = [8, 32], strides = [1, 1]} : vector<8x128xf32> to vector<8x32xf32>
    %125 = vector.extract_strided_slice %122 {offsets = [0, 96], sizes = [8, 32], strides = [1, 1]} : vector<8x128xf32> to vector<8x32xf32>
    %126 = vector.extract_strided_slice %117 {offsets = [0, 64], sizes = [8, 32], strides = [1, 1]} : vector<8x128xf32> to vector<8x32xf32>
    %127 = math.tanh %126 : vector<8x32xf32>
    %128 = arith.mulf %124, %91 : vector<8x32xf32>
    %129 = arith.mulf %123, %127 : vector<8x32xf32>
    %130 = arith.addf %128, %129 : vector<8x32xf32>
    %131 = math.tanh %130 : vector<8x32xf32>
    %132 = arith.mulf %125, %131 : vector<8x32xf32>
    %c3_i32 = arith.constant 3 : i32
    %133 = arith.index_cast %c3_i32 : i32 to index
    %c0_39 = arith.constant 0 : index
    %c0_40 = arith.constant 0 : index
    %134 = vector.load %arg14[%133, %c0_39, %c0_40] : memref<8x8x128xf32, #tpu.memory_space<vmem>>, vector<1x8x128xf32>
    %135 = vector.shape_cast %134 : vector<1x8x128xf32> to vector<8x128xf32>
    %cst_41 = arith.constant dense<0.000000e+00> : vector<8x128xf32>
    %136 = tpu.matmul %113, %9, %cst_41 {dimension_numbers = #tpu.dot_dimension_numbers<[1], [0], [0], [1], [0, 0, 1, 1], [], []>} : vector<8x32xf32>, vector<32x128xf32>, vector<8x128xf32> -> vector<8x128xf32>
    %137 = arith.addf %135, %136 : vector<8x128xf32>
    %138 = arith.negf %137 : vector<8x128xf32>
    %139 = math.exp %138 : vector<8x128xf32>
    %cst_42 = arith.constant 1.000000e+00 : f32
    %140 = vector.broadcast %cst_42 : f32 to vector<8x128xf32>
    %141 = arith.addf %140, %139 : vector<8x128xf32>
    %142 = arith.divf %140, %141 : vector<8x128xf32>
    %143 = vector.extract_strided_slice %142 {offsets = [0, 0], sizes = [8, 32], strides = [1, 1]} : vector<8x128xf32> to vector<8x32xf32>
    %144 = vector.extract_strided_slice %142 {offsets = [0, 32], sizes = [8, 32], strides = [1, 1]} : vector<8x128xf32> to vector<8x32xf32>
    %145 = vector.extract_strided_slice %142 {offsets = [0, 96], sizes = [8, 32], strides = [1, 1]} : vector<8x128xf32> to vector<8x32xf32>
    %146 = vector.extract_strided_slice %137 {offsets = [0, 64], sizes = [8, 32], strides = [1, 1]} : vector<8x128xf32> to vector<8x32xf32>
    %147 = math.tanh %146 : vector<8x32xf32>
    %148 = arith.mulf %144, %111 : vector<8x32xf32>
    %149 = arith.mulf %143, %147 : vector<8x32xf32>
    %150 = arith.addf %148, %149 : vector<8x32xf32>
    %151 = math.tanh %150 : vector<8x32xf32>
    %152 = arith.mulf %145, %151 : vector<8x32xf32>
    %cst_43 = arith.constant dense<0.000000e+00> : vector<8x128xf32>
    %153 = tpu.matmul %152, %10, %cst_43 {dimension_numbers = #tpu.dot_dimension_numbers<[1], [0], [0], [1], [0, 0, 1, 1], [], []>} : vector<8x32xf32>, vector<32x128xf32>, vector<8x128xf32> -> vector<8x128xf32>
    %cst_44 = arith.constant dense<0.000000e+00> : vector<8x128xf32>
    %154 = tpu.matmul %132, %11, %cst_44 {dimension_numbers = #tpu.dot_dimension_numbers<[1], [0], [0], [1], [0, 0, 1, 1], [], []>} : vector<8x32xf32>, vector<32x128xf32>, vector<8x128xf32> -> vector<8x128xf32>
    %155 = arith.addf %153, %154 : vector<8x128xf32>
    %156 = arith.addf %155, %14 : vector<8x128xf32>
    %157 = arith.negf %156 : vector<8x128xf32>
    %158 = math.exp %157 : vector<8x128xf32>
    %cst_45 = arith.constant 1.000000e+00 : f32
    %159 = vector.broadcast %cst_45 : f32 to vector<8x128xf32>
    %160 = arith.addf %159, %158 : vector<8x128xf32>
    %161 = arith.divf %159, %160 : vector<8x128xf32>
    %162 = vector.extract_strided_slice %161 {offsets = [0, 0], sizes = [8, 32], strides = [1, 1]} : vector<8x128xf32> to vector<8x32xf32>
    %163 = vector.extract_strided_slice %161 {offsets = [0, 32], sizes = [8, 32], strides = [1, 1]} : vector<8x128xf32> to vector<8x32xf32>
    %164 = vector.extract_strided_slice %161 {offsets = [0, 96], sizes = [8, 32], strides = [1, 1]} : vector<8x128xf32> to vector<8x32xf32>
    %165 = vector.extract_strided_slice %156 {offsets = [0, 64], sizes = [8, 32], strides = [1, 1]} : vector<8x128xf32> to vector<8x32xf32>
    %166 = math.tanh %165 : vector<8x32xf32>
    %167 = arith.mulf %163, %130 : vector<8x32xf32>
    %168 = arith.mulf %162, %166 : vector<8x32xf32>
    %169 = arith.addf %167, %168 : vector<8x32xf32>
    %170 = math.tanh %169 : vector<8x32xf32>
    %171 = arith.mulf %164, %170 : vector<8x32xf32>
    %c4_i32 = arith.constant 4 : i32
    %172 = arith.index_cast %c4_i32 : i32 to index
    %c0_46 = arith.constant 0 : index
    %c0_47 = arith.constant 0 : index
    %173 = vector.load %arg14[%172, %c0_46, %c0_47] : memref<8x8x128xf32, #tpu.memory_space<vmem>>, vector<1x8x128xf32>
    %174 = vector.shape_cast %173 : vector<1x8x128xf32> to vector<8x128xf32>
    %cst_48 = arith.constant dense<0.000000e+00> : vector<8x128xf32>
    %175 = tpu.matmul %152, %9, %cst_48 {dimension_numbers = #tpu.dot_dimension_numbers<[1], [0], [0], [1], [0, 0, 1, 1], [], []>} : vector<8x32xf32>, vector<32x128xf32>, vector<8x128xf32> -> vector<8x128xf32>
    %176 = arith.addf %174, %175 : vector<8x128xf32>
    %177 = arith.negf %176 : vector<8x128xf32>
    %178 = math.exp %177 : vector<8x128xf32>
    %cst_49 = arith.constant 1.000000e+00 : f32
    %179 = vector.broadcast %cst_49 : f32 to vector<8x128xf32>
    %180 = arith.addf %179, %178 : vector<8x128xf32>
    %181 = arith.divf %179, %180 : vector<8x128xf32>
    %182 = vector.extract_strided_slice %181 {offsets = [0, 0], sizes = [8, 32], strides = [1, 1]} : vector<8x128xf32> to vector<8x32xf32>
    %183 = vector.extract_strided_slice %181 {offsets = [0, 32], sizes = [8, 32], strides = [1, 1]} : vector<8x128xf32> to vector<8x32xf32>
    %184 = vector.extract_strided_slice %181 {offsets = [0, 96], sizes = [8, 32], strides = [1, 1]} : vector<8x128xf32> to vector<8x32xf32>
    %185 = vector.extract_strided_slice %176 {offsets = [0, 64], sizes = [8, 32], strides = [1, 1]} : vector<8x128xf32> to vector<8x32xf32>
    %186 = math.tanh %185 : vector<8x32xf32>
    %187 = arith.mulf %183, %150 : vector<8x32xf32>
    %188 = arith.mulf %182, %186 : vector<8x32xf32>
    %189 = arith.addf %187, %188 : vector<8x32xf32>
    %190 = math.tanh %189 : vector<8x32xf32>
    %191 = arith.mulf %184, %190 : vector<8x32xf32>
    %cst_50 = arith.constant dense<0.000000e+00> : vector<8x128xf32>
    %192 = tpu.matmul %191, %10, %cst_50 {dimension_numbers = #tpu.dot_dimension_numbers<[1], [0], [0], [1], [0, 0, 1, 1], [], []>} : vector<8x32xf32>, vector<32x128xf32>, vector<8x128xf32> -> vector<8x128xf32>
    %cst_51 = arith.constant dense<0.000000e+00> : vector<8x128xf32>
    %193 = tpu.matmul %171, %11, %cst_51 {dimension_numbers = #tpu.dot_dimension_numbers<[1], [0], [0], [1], [0, 0, 1, 1], [], []>} : vector<8x32xf32>, vector<32x128xf32>, vector<8x128xf32> -> vector<8x128xf32>
    %194 = arith.addf %192, %193 : vector<8x128xf32>
    %195 = arith.addf %194, %14 : vector<8x128xf32>
    %196 = arith.negf %195 : vector<8x128xf32>
    %197 = math.exp %196 : vector<8x128xf32>
    %cst_52 = arith.constant 1.000000e+00 : f32
    %198 = vector.broadcast %cst_52 : f32 to vector<8x128xf32>
    %199 = arith.addf %198, %197 : vector<8x128xf32>
    %200 = arith.divf %198, %199 : vector<8x128xf32>
    %201 = vector.extract_strided_slice %200 {offsets = [0, 0], sizes = [8, 32], strides = [1, 1]} : vector<8x128xf32> to vector<8x32xf32>
    %202 = vector.extract_strided_slice %200 {offsets = [0, 32], sizes = [8, 32], strides = [1, 1]} : vector<8x128xf32> to vector<8x32xf32>
    %203 = vector.extract_strided_slice %200 {offsets = [0, 96], sizes = [8, 32], strides = [1, 1]} : vector<8x128xf32> to vector<8x32xf32>
    %204 = vector.extract_strided_slice %195 {offsets = [0, 64], sizes = [8, 32], strides = [1, 1]} : vector<8x128xf32> to vector<8x32xf32>
    %205 = math.tanh %204 : vector<8x32xf32>
    %206 = arith.mulf %202, %169 : vector<8x32xf32>
    %207 = arith.mulf %201, %205 : vector<8x32xf32>
    %208 = arith.addf %206, %207 : vector<8x32xf32>
    %209 = math.tanh %208 : vector<8x32xf32>
    %210 = arith.mulf %203, %209 : vector<8x32xf32>
    %c5_i32 = arith.constant 5 : i32
    %211 = arith.index_cast %c5_i32 : i32 to index
    %c0_53 = arith.constant 0 : index
    %c0_54 = arith.constant 0 : index
    %212 = vector.load %arg14[%211, %c0_53, %c0_54] : memref<8x8x128xf32, #tpu.memory_space<vmem>>, vector<1x8x128xf32>
    %213 = vector.shape_cast %212 : vector<1x8x128xf32> to vector<8x128xf32>
    %cst_55 = arith.constant dense<0.000000e+00> : vector<8x128xf32>
    %214 = tpu.matmul %191, %9, %cst_55 {dimension_numbers = #tpu.dot_dimension_numbers<[1], [0], [0], [1], [0, 0, 1, 1], [], []>} : vector<8x32xf32>, vector<32x128xf32>, vector<8x128xf32> -> vector<8x128xf32>
    %215 = arith.addf %213, %214 : vector<8x128xf32>
    %216 = arith.negf %215 : vector<8x128xf32>
    %217 = math.exp %216 : vector<8x128xf32>
    %cst_56 = arith.constant 1.000000e+00 : f32
    %218 = vector.broadcast %cst_56 : f32 to vector<8x128xf32>
    %219 = arith.addf %218, %217 : vector<8x128xf32>
    %220 = arith.divf %218, %219 : vector<8x128xf32>
    %221 = vector.extract_strided_slice %220 {offsets = [0, 0], sizes = [8, 32], strides = [1, 1]} : vector<8x128xf32> to vector<8x32xf32>
    %222 = vector.extract_strided_slice %220 {offsets = [0, 32], sizes = [8, 32], strides = [1, 1]} : vector<8x128xf32> to vector<8x32xf32>
    %223 = vector.extract_strided_slice %220 {offsets = [0, 96], sizes = [8, 32], strides = [1, 1]} : vector<8x128xf32> to vector<8x32xf32>
    %224 = vector.extract_strided_slice %215 {offsets = [0, 64], sizes = [8, 32], strides = [1, 1]} : vector<8x128xf32> to vector<8x32xf32>
    %225 = math.tanh %224 : vector<8x32xf32>
    %226 = arith.mulf %222, %189 : vector<8x32xf32>
    %227 = arith.mulf %221, %225 : vector<8x32xf32>
    %228 = arith.addf %226, %227 : vector<8x32xf32>
    %229 = math.tanh %228 : vector<8x32xf32>
    %230 = arith.mulf %223, %229 : vector<8x32xf32>
    %cst_57 = arith.constant dense<0.000000e+00> : vector<8x128xf32>
    %231 = tpu.matmul %230, %10, %cst_57 {dimension_numbers = #tpu.dot_dimension_numbers<[1], [0], [0], [1], [0, 0, 1, 1], [], []>} : vector<8x32xf32>, vector<32x128xf32>, vector<8x128xf32> -> vector<8x128xf32>
    %cst_58 = arith.constant dense<0.000000e+00> : vector<8x128xf32>
    %232 = tpu.matmul %210, %11, %cst_58 {dimension_numbers = #tpu.dot_dimension_numbers<[1], [0], [0], [1], [0, 0, 1, 1], [], []>} : vector<8x32xf32>, vector<32x128xf32>, vector<8x128xf32> -> vector<8x128xf32>
    %233 = arith.addf %231, %232 : vector<8x128xf32>
    %234 = arith.addf %233, %14 : vector<8x128xf32>
    %235 = arith.negf %234 : vector<8x128xf32>
    %236 = math.exp %235 : vector<8x128xf32>
    %cst_59 = arith.constant 1.000000e+00 : f32
    %237 = vector.broadcast %cst_59 : f32 to vector<8x128xf32>
    %238 = arith.addf %237, %236 : vector<8x128xf32>
    %239 = arith.divf %237, %238 : vector<8x128xf32>
    %240 = vector.extract_strided_slice %239 {offsets = [0, 0], sizes = [8, 32], strides = [1, 1]} : vector<8x128xf32> to vector<8x32xf32>
    %241 = vector.extract_strided_slice %239 {offsets = [0, 32], sizes = [8, 32], strides = [1, 1]} : vector<8x128xf32> to vector<8x32xf32>
    %242 = vector.extract_strided_slice %239 {offsets = [0, 96], sizes = [8, 32], strides = [1, 1]} : vector<8x128xf32> to vector<8x32xf32>
    %243 = vector.extract_strided_slice %234 {offsets = [0, 64], sizes = [8, 32], strides = [1, 1]} : vector<8x128xf32> to vector<8x32xf32>
    %244 = math.tanh %243 : vector<8x32xf32>
    %245 = arith.mulf %241, %208 : vector<8x32xf32>
    %246 = arith.mulf %240, %244 : vector<8x32xf32>
    %247 = arith.addf %245, %246 : vector<8x32xf32>
    %248 = math.tanh %247 : vector<8x32xf32>
    %249 = arith.mulf %242, %248 : vector<8x32xf32>
    %c6_i32 = arith.constant 6 : i32
    %250 = arith.index_cast %c6_i32 : i32 to index
    %c0_60 = arith.constant 0 : index
    %c0_61 = arith.constant 0 : index
    %251 = vector.load %arg14[%250, %c0_60, %c0_61] : memref<8x8x128xf32, #tpu.memory_space<vmem>>, vector<1x8x128xf32>
    %252 = vector.shape_cast %251 : vector<1x8x128xf32> to vector<8x128xf32>
    %cst_62 = arith.constant dense<0.000000e+00> : vector<8x128xf32>
    %253 = tpu.matmul %230, %9, %cst_62 {dimension_numbers = #tpu.dot_dimension_numbers<[1], [0], [0], [1], [0, 0, 1, 1], [], []>} : vector<8x32xf32>, vector<32x128xf32>, vector<8x128xf32> -> vector<8x128xf32>
    %254 = arith.addf %252, %253 : vector<8x128xf32>
    %255 = arith.negf %254 : vector<8x128xf32>
    %256 = math.exp %255 : vector<8x128xf32>
    %cst_63 = arith.constant 1.000000e+00 : f32
    %257 = vector.broadcast %cst_63 : f32 to vector<8x128xf32>
    %258 = arith.addf %257, %256 : vector<8x128xf32>
    %259 = arith.divf %257, %258 : vector<8x128xf32>
    %260 = vector.extract_strided_slice %259 {offsets = [0, 0], sizes = [8, 32], strides = [1, 1]} : vector<8x128xf32> to vector<8x32xf32>
    %261 = vector.extract_strided_slice %259 {offsets = [0, 32], sizes = [8, 32], strides = [1, 1]} : vector<8x128xf32> to vector<8x32xf32>
    %262 = vector.extract_strided_slice %259 {offsets = [0, 96], sizes = [8, 32], strides = [1, 1]} : vector<8x128xf32> to vector<8x32xf32>
    %263 = vector.extract_strided_slice %254 {offsets = [0, 64], sizes = [8, 32], strides = [1, 1]} : vector<8x128xf32> to vector<8x32xf32>
    %264 = math.tanh %263 : vector<8x32xf32>
    %265 = arith.mulf %261, %228 : vector<8x32xf32>
    %266 = arith.mulf %260, %264 : vector<8x32xf32>
    %267 = arith.addf %265, %266 : vector<8x32xf32>
    %268 = math.tanh %267 : vector<8x32xf32>
    %269 = arith.mulf %262, %268 : vector<8x32xf32>
    %cst_64 = arith.constant dense<0.000000e+00> : vector<8x128xf32>
    %270 = tpu.matmul %269, %10, %cst_64 {dimension_numbers = #tpu.dot_dimension_numbers<[1], [0], [0], [1], [0, 0, 1, 1], [], []>} : vector<8x32xf32>, vector<32x128xf32>, vector<8x128xf32> -> vector<8x128xf32>
    %cst_65 = arith.constant dense<0.000000e+00> : vector<8x128xf32>
    %271 = tpu.matmul %249, %11, %cst_65 {dimension_numbers = #tpu.dot_dimension_numbers<[1], [0], [0], [1], [0, 0, 1, 1], [], []>} : vector<8x32xf32>, vector<32x128xf32>, vector<8x128xf32> -> vector<8x128xf32>
    %272 = arith.addf %270, %271 : vector<8x128xf32>
    %273 = arith.addf %272, %14 : vector<8x128xf32>
    %274 = arith.negf %273 : vector<8x128xf32>
    %275 = math.exp %274 : vector<8x128xf32>
    %cst_66 = arith.constant 1.000000e+00 : f32
    %276 = vector.broadcast %cst_66 : f32 to vector<8x128xf32>
    %277 = arith.addf %276, %275 : vector<8x128xf32>
    %278 = arith.divf %276, %277 : vector<8x128xf32>
    %279 = vector.extract_strided_slice %278 {offsets = [0, 0], sizes = [8, 32], strides = [1, 1]} : vector<8x128xf32> to vector<8x32xf32>
    %280 = vector.extract_strided_slice %278 {offsets = [0, 32], sizes = [8, 32], strides = [1, 1]} : vector<8x128xf32> to vector<8x32xf32>
    %281 = vector.extract_strided_slice %278 {offsets = [0, 96], sizes = [8, 32], strides = [1, 1]} : vector<8x128xf32> to vector<8x32xf32>
    %282 = vector.extract_strided_slice %273 {offsets = [0, 64], sizes = [8, 32], strides = [1, 1]} : vector<8x128xf32> to vector<8x32xf32>
    %283 = math.tanh %282 : vector<8x32xf32>
    %284 = arith.mulf %280, %247 : vector<8x32xf32>
    %285 = arith.mulf %279, %283 : vector<8x32xf32>
    %286 = arith.addf %284, %285 : vector<8x32xf32>
    %287 = math.tanh %286 : vector<8x32xf32>
    %288 = arith.mulf %281, %287 : vector<8x32xf32>
    %c7_i32 = arith.constant 7 : i32
    %289 = arith.index_cast %c7_i32 : i32 to index
    %c0_67 = arith.constant 0 : index
    %c0_68 = arith.constant 0 : index
    %290 = vector.load %arg14[%289, %c0_67, %c0_68] : memref<8x8x128xf32, #tpu.memory_space<vmem>>, vector<1x8x128xf32>
    %291 = vector.shape_cast %290 : vector<1x8x128xf32> to vector<8x128xf32>
    %cst_69 = arith.constant dense<0.000000e+00> : vector<8x128xf32>
    %292 = tpu.matmul %269, %9, %cst_69 {dimension_numbers = #tpu.dot_dimension_numbers<[1], [0], [0], [1], [0, 0, 1, 1], [], []>} : vector<8x32xf32>, vector<32x128xf32>, vector<8x128xf32> -> vector<8x128xf32>
    %293 = arith.addf %291, %292 : vector<8x128xf32>
    %294 = arith.negf %293 : vector<8x128xf32>
    %295 = math.exp %294 : vector<8x128xf32>
    %cst_70 = arith.constant 1.000000e+00 : f32
    %296 = vector.broadcast %cst_70 : f32 to vector<8x128xf32>
    %297 = arith.addf %296, %295 : vector<8x128xf32>
    %298 = arith.divf %296, %297 : vector<8x128xf32>
    %299 = vector.extract_strided_slice %298 {offsets = [0, 0], sizes = [8, 32], strides = [1, 1]} : vector<8x128xf32> to vector<8x32xf32>
    %300 = vector.extract_strided_slice %298 {offsets = [0, 32], sizes = [8, 32], strides = [1, 1]} : vector<8x128xf32> to vector<8x32xf32>
    %301 = vector.extract_strided_slice %298 {offsets = [0, 96], sizes = [8, 32], strides = [1, 1]} : vector<8x128xf32> to vector<8x32xf32>
    %302 = vector.extract_strided_slice %293 {offsets = [0, 64], sizes = [8, 32], strides = [1, 1]} : vector<8x128xf32> to vector<8x32xf32>
    %303 = math.tanh %302 : vector<8x32xf32>
    %304 = arith.mulf %300, %267 : vector<8x32xf32>
    %305 = arith.mulf %299, %303 : vector<8x32xf32>
    %306 = arith.addf %304, %305 : vector<8x32xf32>
    %307 = math.tanh %306 : vector<8x32xf32>
    %308 = arith.mulf %301, %307 : vector<8x32xf32>
    %cst_71 = arith.constant dense<0.000000e+00> : vector<8x128xf32>
    %309 = tpu.matmul %308, %10, %cst_71 {dimension_numbers = #tpu.dot_dimension_numbers<[1], [0], [0], [1], [0, 0, 1, 1], [], []>} : vector<8x32xf32>, vector<32x128xf32>, vector<8x128xf32> -> vector<8x128xf32>
    %cst_72 = arith.constant dense<0.000000e+00> : vector<8x128xf32>
    %310 = tpu.matmul %288, %11, %cst_72 {dimension_numbers = #tpu.dot_dimension_numbers<[1], [0], [0], [1], [0, 0, 1, 1], [], []>} : vector<8x32xf32>, vector<32x128xf32>, vector<8x128xf32> -> vector<8x128xf32>
    %311 = arith.addf %309, %310 : vector<8x128xf32>
    %312 = arith.addf %311, %14 : vector<8x128xf32>
    %313 = arith.negf %312 : vector<8x128xf32>
    %314 = math.exp %313 : vector<8x128xf32>
    %cst_73 = arith.constant 1.000000e+00 : f32
    %315 = vector.broadcast %cst_73 : f32 to vector<8x128xf32>
    %316 = arith.addf %315, %314 : vector<8x128xf32>
    %317 = arith.divf %315, %316 : vector<8x128xf32>
    %318 = vector.extract_strided_slice %317 {offsets = [0, 0], sizes = [8, 32], strides = [1, 1]} : vector<8x128xf32> to vector<8x32xf32>
    %319 = vector.extract_strided_slice %317 {offsets = [0, 32], sizes = [8, 32], strides = [1, 1]} : vector<8x128xf32> to vector<8x32xf32>
    %320 = vector.extract_strided_slice %317 {offsets = [0, 96], sizes = [8, 32], strides = [1, 1]} : vector<8x128xf32> to vector<8x32xf32>
    %321 = vector.extract_strided_slice %312 {offsets = [0, 64], sizes = [8, 32], strides = [1, 1]} : vector<8x128xf32> to vector<8x32xf32>
    %322 = math.tanh %321 : vector<8x32xf32>
    %323 = arith.mulf %319, %286 : vector<8x32xf32>
    %324 = arith.mulf %318, %322 : vector<8x32xf32>
    %325 = arith.addf %323, %324 : vector<8x32xf32>
    %326 = math.tanh %325 : vector<8x32xf32>
    %327 = arith.mulf %320, %326 : vector<8x32xf32>
    %c8_i32 = arith.constant 8 : i32
    %c0_74 = arith.constant 0 : index
    %c0_75 = arith.constant 0 : index
    %328 = vector.load %arg7[%c0_74, %c0_75] : memref<32x16xf32, #tpu.memory_space<vmem>>, vector<32x16xf32>
    %cst_76 = arith.constant dense<0.000000e+00> : vector<8x16xf32>
    %329 = tpu.matmul %327, %328, %cst_76 {dimension_numbers = #tpu.dot_dimension_numbers<[1], [0], [0], [1], [0, 0, 1, 1], [], []>} : vector<8x32xf32>, vector<32x16xf32>, vector<8x16xf32> -> vector<8x16xf32>
    %c0_77 = arith.constant 0 : index
    %c0_78 = arith.constant 0 : index
    %330 = vector.load %arg8[%c0_77, %c0_78] : memref<1x16xf32, #tpu.memory_space<vmem>>, vector<1x16xf32>
    %331 = vector.broadcast %330 : vector<1x16xf32> to vector<8x16xf32>
    %332 = arith.addf %329, %331 : vector<8x16xf32>
    %cst_79 = arith.constant dense<0.000000e+00> : vector<8xf32>
    %333 = vector.multi_reduction <add>, %332, %cst_79 [1] : vector<8x16xf32> to vector<8xf32>
    %334 = vector.shape_cast %333 : vector<8xf32> to vector<8x1xf32>
    %cst_80 = arith.constant 1.600000e+01 : f32
    %335 = vector.broadcast %cst_80 : f32 to vector<8x1xf32>
    %336 = arith.divf %334, %335 : vector<8x1xf32>
    %337 = vector.broadcast %336 : vector<8x1xf32> to vector<8x16xf32>
    %338 = arith.subf %332, %337 : vector<8x16xf32>
    %339 = arith.mulf %338, %338 : vector<8x16xf32>
    %cst_81 = arith.constant dense<0.000000e+00> : vector<8xf32>
    %340 = vector.multi_reduction <add>, %339, %cst_81 [1] : vector<8x16xf32> to vector<8xf32>
    %341 = vector.shape_cast %340 : vector<8xf32> to vector<8x1xf32>
    %cst_82 = arith.constant 1.600000e+01 : f32
    %342 = vector.broadcast %cst_82 : f32 to vector<8x1xf32>
    %343 = arith.divf %341, %342 : vector<8x1xf32>
    %344 = vector.broadcast %336 : vector<8x1xf32> to vector<8x16xf32>
    %345 = arith.subf %332, %344 : vector<8x16xf32>
    %cst_83 = arith.constant 9.99999974E-6 : f32
    %346 = vector.broadcast %cst_83 : f32 to vector<8x1xf32>
    %347 = arith.addf %343, %346 : vector<8x1xf32>
    %348 = math.rsqrt %347 : vector<8x1xf32>
    %349 = vector.broadcast %348 : vector<8x1xf32> to vector<8x16xf32>
    %350 = arith.mulf %345, %349 : vector<8x16xf32>
    %c0_84 = arith.constant 0 : index
    %c0_85 = arith.constant 0 : index
    %351 = vector.load %arg9[%c0_84, %c0_85] : memref<1x16xf32, #tpu.memory_space<vmem>>, vector<1x16xf32>
    %352 = vector.broadcast %351 : vector<1x16xf32> to vector<8x16xf32>
    %353 = arith.mulf %350, %352 : vector<8x16xf32>
    %c0_86 = arith.constant 0 : index
    %c0_87 = arith.constant 0 : index
    %354 = vector.load %arg10[%c0_86, %c0_87] : memref<1x16xf32, #tpu.memory_space<vmem>>, vector<1x16xf32>
    %355 = vector.broadcast %354 : vector<1x16xf32> to vector<8x16xf32>
    %356 = arith.addf %353, %355 : vector<8x16xf32>
    %cst_88 = arith.constant 0.000000e+00 : f32
    %357 = vector.broadcast %cst_88 : f32 to vector<8x16xf32>
    %358 = arith.cmpf ogt, %356, %357 : vector<8x16xf32>
    %cst_89 = arith.constant 2.000000e-01 : f32
    %359 = vector.broadcast %cst_89 : f32 to vector<8x16xf32>
    %360 = arith.mulf %359, %356 : vector<8x16xf32>
    %361 = arith.select %358, %356, %360 : vector<8x16xi1>, vector<8x16xf32>
    %c0_90 = arith.constant 0 : index
    %c0_91 = arith.constant 0 : index
    %362 = vector.load %arg11[%c0_90, %c0_91] : memref<16x128xf32, #tpu.memory_space<vmem>>, vector<16x128xf32>
    %cst_92 = arith.constant dense<0.000000e+00> : vector<8x128xf32>
    %363 = tpu.matmul %361, %362, %cst_92 {dimension_numbers = #tpu.dot_dimension_numbers<[1], [0], [0], [1], [0, 0, 1, 1], [], []>} : vector<8x16xf32>, vector<16x128xf32>, vector<8x128xf32> -> vector<8x128xf32>
    %c0_93 = arith.constant 0 : index
    %c0_94 = arith.constant 0 : index
    %364 = vector.load %arg12[%c0_93, %c0_94] : memref<1x128xf32, #tpu.memory_space<vmem>>, vector<1x128xf32>
    %365 = vector.broadcast %364 : vector<1x128xf32> to vector<8x128xf32>
    %366 = arith.addf %363, %365 : vector<8x128xf32>
    %c0_95 = arith.constant 0 : index
    %c0_96 = arith.constant 0 : index
    %367 = vector.load %arg13[%c0_95, %c0_96] : memref<8x128xf32, #tpu.memory_space<vmem>>, vector<8x128xf32>
    tpu.vector_store %arg13[%c0_95, %c0_96], %366 {strides = array<i32>} : memref<8x128xf32, #tpu.memory_space<vmem>>, vector<8x128xf32>,
    return
  }
}

</mosaic_0001>

<bundles_post_ra>
// kernel: tpu_custom_call.1
= control target key start
LH: loop header
LB: loop body
LE: loop exit
PB: predicated region body
PF: predicated region fallthrough
CT: control target
= control target key end

     0   :  { %18 = vsyncpa [#allocation4], 0  ;;  %s4198_s0 = inlined_call_operand.hbm [shape: f32[8,8,16], index: 0, kind: input, shape index: {}]   ;;  %s4199_s1 = inlined_call_operand.hbm [shape: f32[16,128], index: 1, kind: input, shape index: {}]   ;;  %s4200_s2 = inlined_call_operand.vmem [shape: f32[32,128], index: 2, kind: input, shape index: {}]   ;;  %s4201_s3 = inlined_call_operand.vmem [shape: f32[1,128], index: 3, kind: input, shape index: {}]   ;;  %s4202_s4 = inlined_call_operand.hbm [shape: f32[32,128], index: 4, kind: input, shape index: {}]   ;;  %s4203_s5 = inlined_call_operand.vmem [shape: f32[32,128], index: 5, kind: input, shape index: {}]   ;;  %s4204_s6 = inlined_call_operand.vmem [shape: f32[1,128], index: 6, kind: input, shape index: {}]   ;;  %s4205_s7 = inlined_call_operand.vmem [shape: f32[32,16], index: 7, kind: input, shape index: {}]   ;;  %s4206_s8 = inlined_call_operand.hbm [shape: f32[1,16], index: 8, kind: input, shape index: {}]   ;;  %s4207_s9 = inlined_call_operand.hbm [shape: f32[1,16], index: 9, kind: input, shape index: {}]   ;;  %s4208_s10 = inlined_call_operand.vmem [shape: f32[1,16], index: 10, kind: input, shape index: {}]   ;;  %s4209_s11 = inlined_call_operand.vmem [shape: f32[16,128], index: 11, kind: input, shape index: {}]   ;;  %s4210_s12 = inlined_call_operand.vmem [shape: f32[1,128], index: 12, kind: input, shape index: {}]   ;;  %s4211_s13 = inlined_call_operand.hbm [shape: f32[8,128], index: 13, kind: output, shape index: {}]  }
   0x1   :  { %19 = vsyncpa [#allocation7], 0 }
   0x2   :  { %20 = vsyncpa [#allocation10], 0 }
   0x3   :  { %21 = vsyncpa [#allocation5], 0  ;;  %s3607_s25 = smov [#allocation6]   ;;  %s3608_s27 = smov [#allocation9]  }
   0x4   :  { %s39_s26 = sshll.u32 %s3607_s25, 4  ;;  %s74_s28 = sshll.u32 %s3608_s27, 4  ;;  %s40_s26 = int_to_ptr.vmem [resolvable:$true] %s39_s26  ;;  %s3690_s28 = int_to_ptr.vmem [resolvable:$true] %s74_s28 }
   0x5   :  { %s3467_s14 = scalar_lea.hbm %s4199_s1, 256 }
   0x6   :  { %p3468_p0 = scmp.ne.s32.totalorder %s4199_s1, %s3467_s14  ;;  %p3471_p1 = scmp.lt.u32.totalorder %s3467_s14, %s4199_s1 }
   0x8   :  { %p3473_p2 = pnand %p3471_p1, %p3468_p0 }
   0xa   :  { %3476 = shalt.err (!%p3473_p2)
}
   0xb   :  { %s3477_s19 = scalar_lea.vmem %s40_s26, 256  ;;  %p3482_p4 = scmp.lt.s32.totalorder %s40_s26, %s40_s26 }
   0xc   :  { %p3478_p3 = scmp.ne.s32.totalorder %s40_s26, %s3477_s19  ;;  %p3483_p5 = scmp.lt.s32.totalorder %s3477_s19, %s3477_s19 }
   0xe   :  { %p3484_p6 = por %p3483_p5, %p3482_p4 }
  0x10   :  { %p3485_p7 = pnand %p3484_p6, %p3478_p3 }
  0x12   :  { %3488 = shalt.err (!%p3485_p7)
}
  0x13   :  { %s3609_s20 = smov 128   ;;  %s3610_s21 = smov 8  }
  0x14   :  { %45 = dma.hbm_to_vmem [thread:$0]  %s4199_s1, 256, %s40_s26, [#allocation7], %s3609_s20, %s3609_s20, %s3610_s21  }
  0x15   :  { %s3489_s27 = scalar_lea.hbm %s4206_s8, 16 }
  0x16   :  { %p3490_p8 = scmp.ne.s32.totalorder %s4206_s8, %s3489_s27  ;;  %p3493_p9 = scmp.lt.u32.totalorder %s3489_s27, %s4206_s8 }
  0x18   :  { %p3495_p10 = pnand %p3493_p9, %p3490_p8 }
  0x1a   :  { %3498 = shalt.err (!%p3495_p10)
}
  0x1b   :  { %s3499_s16 = scalar_lea.vmem %s3690_s28, 16  ;;  %s3503_s1 = scalar_lea.vmem %s3690_s28, 32 }
  0x1c   :  { %p3500_p11 = scmp.ne.s32.totalorder %s3690_s28, %s3499_s16  ;;  %p3504_p12 = scmp.lt.s32.totalorder %s3690_s28, %s3690_s28 }
  0x1d   :  { %p3505_p13 = scmp.lt.s32.totalorder %s3503_s1, %s3499_s16 }
  0x1f   :  { %p3506_p0 = por %p3505_p13, %p3504_p12 }
  0x21   :  { %p3507_p1 = pnand %p3506_p0, %p3500_p11 }
  0x23   :  { %3510 = shalt.err (!%p3507_p1)
}
  0x24   :  { %77 = dma.hbm_to_vmem [thread:$0]  %s4206_s8, 16, %s3690_s28, [#allocation10]  }
  0x25   :  { %s3611_s18 = smov [#allocation3]   ;;  %s3612_s22 = smov [#allocation8]  }
  0x26   :  { %s27_s19 = sshll.u32 %s3611_s18, 4  ;;  %s55_s23 = sshll.u32 %s3612_s22, 4  ;;  %s28_s19 = int_to_ptr.vmem [resolvable:$true] %s27_s19  ;;  %s3725_s23 = int_to_ptr.vmem [resolvable:$true] %s55_s23 }
  0x27   :  { %s3511_s27 = scalar_lea.hbm %s4198_s0, 1024 }
  0x28   :  { %p3512_p2 = scmp.ne.s32.totalorder %s4198_s0, %s3511_s27  ;;  %p3515_p3 = scmp.lt.u32.totalorder %s3511_s27, %s4198_s0 }
  0x2a   :  { %p3517_p4 = pnand %p3515_p3, %p3512_p2 }
  0x2c   :  { %3520 = shalt.err (!%p3517_p4)
}
  0x2d   :  { %s3521_s8 = scalar_lea.vmem %s28_s19, 1024  ;;  %p3526_p6 = scmp.lt.s32.totalorder %s28_s19, %s28_s19 }
  0x2e   :  { %p3522_p5 = scmp.ne.s32.totalorder %s28_s19, %s3521_s8  ;;  %p3527_p7 = scmp.lt.s32.totalorder %s3521_s8, %s3521_s8 }
  0x30   :  { %p3528_p8 = por %p3527_p7, %p3526_p6 }
  0x32   :  { %p3529_p9 = pnand %p3528_p8, %p3522_p5 }
  0x34   :  { %3532 = shalt.err (!%p3529_p9)
}
  0x35   :  { %33 = dma.hbm_to_vmem [thread:$0]  %s4198_s0, 1024, %s28_s19, [#allocation4], %s3609_s20, %s3609_s20, %s3610_s21  }
  0x36   :  { %s3533_s17 = scalar_lea.hbm %s4202_s4, 512 }
  0x37   :  { %p3534_p10 = scmp.ne.s32.totalorder %s4202_s4, %s3533_s17  ;;  %p3537_p11 = scmp.lt.u32.totalorder %s3533_s17, %s4202_s4 }
  0x39   :  { %p3539_p12 = pnand %p3537_p11, %p3534_p10 }
  0x3b   :  { %3542 = shalt.err (!%p3539_p12)
}
  0x3c   :  { %s3543_s27 = scalar_lea.vmem %s3725_s23, 512  ;;  %p3548_p0 = scmp.lt.s32.totalorder %s3725_s23, %s3725_s23 }
  0x3d   :  { %p3544_p13 = scmp.ne.s32.totalorder %s3725_s23, %s3543_s27  ;;  %p3549_p1 = scmp.lt.s32.totalorder %s3543_s27, %s3543_s27 }
  0x3f   :  { %p3550_p2 = por %p3549_p1, %p3548_p0 }
  0x41   :  { %p3551_p3 = pnand %p3550_p2, %p3544_p13 }
  0x43   :  { %3554 = shalt.err (!%p3551_p3)
}
  0x44   :  { %61 = dma.hbm_to_vmem [thread:$0]  %s4202_s4, 512, %s3725_s23, [#allocation7], %s3609_s20, %s3609_s20, %s3610_s21  }
  0x45   :  { %s3613_s29 = smov [#allocation11]   ;;  %s3555_s8 = scalar_lea.hbm %s4207_s9, 16 }
  0x46   :  { %s84_s30 = sshll.u32 %s3613_s29, 4  ;;  %p3556_p4 = scmp.ne.s32.totalorder %s4207_s9, %s3555_s8  ;;  %s85_s30 = int_to_ptr.vmem [resolvable:$true] %s84_s30 }
  0x47   :  { %p3559_p5 = scmp.lt.u32.totalorder %s3555_s8, %s4207_s9 }
  0x49   :  { %p3561_p6 = pnand %p3559_p5, %p3556_p4 }
  0x4b   :  { %3564 = shalt.err (!%p3561_p6)
}
  0x4c   :  { %s3565_s17 = scalar_lea.vmem %s85_s30, 16  ;;  %s3569_s4 = scalar_lea.vmem %s85_s30, 32 }
  0x4d   :  { %p3566_p7 = scmp.ne.s32.totalorder %s85_s30, %s3565_s17  ;;  %p3570_p8 = scmp.lt.s32.totalorder %s85_s30, %s85_s30 }
  0x4e   :  { %p3571_p9 = scmp.lt.s32.totalorder %s3569_s4, %s3565_s17 }
  0x50   :  { %p3572_p10 = por %p3571_p9, %p3570_p8 }
  0x52   :  { %p3573_p11 = pnand %p3572_p10, %p3566_p7 }
  0x54   :  { %3576 = shalt.err (!%p3573_p11)
}
  0x55   :  { %87 = dma.hbm_to_vmem [thread:$0]  %s4207_s9, 16, %s85_s30, [#allocation10]  }
  0x56   :  { %3599 = dma.done.wait [#allocation4], 1024  }
  0x57   :  { %3600 = vsyncadd [#allocation4], 4294966272 }
  0x58   :  { %3601 = dma.done.wait [#allocation7], 768  }
  0x59   :  { %3602 = vsyncadd [#allocation7], 4294966528 }
  0x5a   :  { %3603 = dma.done.wait [#allocation10], 32  }
  0x5b   :  { %3604 = vsyncadd [#allocation10], 4294967264  ;;  %v3614_v0 = vmov 0.0|0.0   ;;  %vm3615_vm0 = vmmov 0   ;;  %v3616_v1 = vmov 0.0   ;;  %vm126_vm1 = vcmask 130048  }
  0x5c   :  { %3170 = vmatprep.subr.bf16.mxu1 %v3614_v0  ;;  %2892 = vmatprep.mubr.msk.f32.mxu1 %vm3615_vm0, %v3616_v1  ;;  %v117_v2 = vld [vmem:[#allocation6] sm:$0xff]  ;;  %v118_v3 = vld [vmem:[#allocation6 + $0x8] sm:$0xff]  ;;  %v266_v9 = vld [vmem:[%s4200_s2 + $0x10] sm:$0xff]  ;;  %s3617_s29 = smov 64   ;;  %s3618_s30 = smov 32   ;;  %vm284_vm2 = vcmask 261120  }
  0x5d   :  { %v264_v4 = vld [vmem:[%s4200_s2] sm:$0xff]  ;;  %v3166_v5 = vpack.c.bf16 %v118_v3, %v117_v2  ;;  %v265_v6 = vld [vmem:[%s4200_s2 + $0x8] sm:$0xff]  ;;  %v267_v10 = vld [vmem:[%s4200_s2 + $0x18] sm:$0xff]  ;;  %s3619_s14 = smov [#allocation12]  }
  0x5e   :  { %v109_v7 = vld [vmem:[#allocation3] sm:$0xff]  ;;  %v3783_v8 = vpack.c.bf16 %v265_v6, %v264_v4  ;;  %v110_v11 = vld [vmem:[#allocation3 + $0x8] sm:$0xff]  ;;  %v3793_v12 = vpack.c.bf16 %v267_v10, %v266_v9  ;;  %v268_v30 = vld [vmem:[#allocation8] sm:$0xff]  ;;  %s2665_s15 = sshll.u32 %s3619_s14, 4  ;;  %s2666_s15 = int_to_ptr.vmem [resolvable:$true] %s2665_s15 }
  0x5f   :  { %2872 = vmatprep.mubr.msk.f32.mxu0 %vm126_vm1, %v109_v7  ;;  %3167 = vmatprep.subr.bf16.mxu0 %v3166_v5  ;;  %v3806_v13 = vld [vmem:[%s4201_s3] ss:$0 sm:$0xff]  ;;  %v269_v31 = vld [vmem:[#allocation8 + $0x8] sm:$0xff]  ;;  %v273_v34 = vld [vmem:[%s4203_s5 + $0x8] sm:$0xff]  ;;  %s3577_s8 = scalar_lea.vmem %s2666_s15, 128  ;;  %p3582_p13 = scmp.lt.s32.totalorder %s2666_s15, %s2666_s15 }
  0x60   :  { %3172 = vmatpush3.bf16.msra.mxu1 %v3783_v8  ;;  %3169 = vmatpush3.bf16.msra.mxu0 %v3166_v5  ;;  %v272_v32 = vld [vmem:[%s4203_s5] sm:$0xff]  ;;  %v3819_v33 = vpack.c.bf16 %v269_v31, %v268_v30  ;;  %v111_v35 = vld [vmem:[#allocation3 + $0x10] sm:$0xff]  ;;  %v112_v36 = vld [vmem:[#allocation3 + $0x18] sm:$0xff]  ;;  %p3578_p12 = scmp.ne.s32.totalorder %s2666_s15, %s3577_s8  ;;  %p3583_p0 = scmp.lt.s32.totalorder %s3577_s8, %s3577_s8 }
  0x61   :  { %3173 = vmatprep.subr.bf16.mxu1 %v3614_v0  ;;  %3182 = vmatprep.subr.bf16.mxu0 %v3614_v0  ;;  %v3824_v37 = vpack.c.bf16 %v273_v34, %v272_v32  ;;  %v274_v38 = vld [vmem:[%s4203_s5 + $0x10] sm:$0xff]  ;;  %v275_v39 = vld [vmem:[%s4203_s5 + $0x18] sm:$0xff]  ;;  %v113_v40 = vld [vmem:[#allocation3 + $0x20] sm:$0xff] }
  0x62   :  { %v270_v41 = vld [vmem:[#allocation8 + $0x10] sm:$0xff]  ;;  %v271_v42 = vld [vmem:[#allocation8 + $0x18] sm:$0xff]  ;;  %v3836_v43 = vpack.c.bf16 %v275_v39, %v274_v38  ;;  %v115_v46 = vld [vmem:[#allocation3 + $0x30] sm:$0xff]  ;;  %p3584_p1 = por %p3583_p0, %p3582_p13 }
  0x63   :  { %2873 = vmatmul.mubr.msk.f32.vlgmr.msra.gmra.mrb[0].mxu0 %vm126_vm1, %v110_v11  ;;  %v3838_v44 = vpack.c.bf16 %v271_v42, %v270_v41  ;;  %v114_v45 = vld [vmem:[#allocation3 + $0x28] sm:$0xff]  ;;  %v116_v47 = vld [vmem:[#allocation3 + $0x38] sm:$0xff]  ;;  %v3892_v61 = vld [vmem:[%s4204_s6] ss:$0 sm:$0xff] }
  0x64   :  { %3175 = vmatpush3.bf16.msra.mxu1 %v3793_v12  ;;  %2875 = vmatprep.mubr.msk.f32.mxu0 %vm126_vm1, %v111_v35  ;;  %p3585_p2 = pnand %p3584_p1, %p3578_p12 }
  0x65   :  { %3176 = vmatprep.subr.bf16.mxu1 %v3614_v0  ;;  %3184 = vmatpush3.bf16.msra.mxu0 %v3819_v33 }
  0x66   :  { %3185 = vmatprep.subr.bf16.mxu0 %v3614_v0 }
  0x67   :  { %2893 = vmatmul.mubr.f32.vlgmr.msra.gmra.mrb[0].mxu1 %v3616_v1  ;;  %2876 = vmatmul.mubr.msk.f32.gmra.mrb[2].mxu0 %vm126_vm1, %v112_v36 }
  0x68   :  { %2903 = vmatprep.mubr.msk.f32.mxu1 %vm3615_vm0, %v3616_v1  ;;  %3178 = vmatpush3.bf16.msra.mxu1 %v3824_v37 }
  0x69   :  { %3179 = vmatprep.subr.bf16.mxu1 %v3614_v0  ;;  %2878 = vmatprep.mubr.msk.f32.mxu0 %vm126_vm1, %v113_v40 }
  0x6a   :  { %3187 = vmatpush3.bf16.msra.mxu0 %v3838_v44 }
  0x6b   :  { %2879 = vmatmul.mubr.msk.f32.gmra.mrb[4].mxu0 %vm126_vm1, %v114_v45  ;;  %3194 = vmatprep.subr.bf16.mxu0 %v3614_v0 }
  0x6c   :  { %3181 = vmatpush3.bf16.msra.mxu1 %v3836_v43  ;;  %2881 = vmatprep.mubr.msk.f32.mxu0 %vm126_vm1, %v115_v46 }
  0x6d   :  { %3188 = vmatprep.subr.bf16.mxu1 %v3614_v0 }
  0x6f   :  { %2904 = vmatmul.mubr.f32.vlgmr.msra.gmra.mrb[2].mxu1 %v3616_v1  ;;  %2882 = vmatmul.mubr.msk.f32.gmra.mrb[6].mxu0 %vm126_vm1, %v116_v47 }
  0x70   :  { %3190 = vmatpush3.bf16.msra.mxu1 %v3783_v8  ;;  %2914 = vmatprep.mubr.msk.f32.mxu0 %vm3615_vm0, %v3616_v1 }
  0x71   :  { %3191 = vmatprep.subr.bf16.mxu1 %v3614_v0  ;;  %2925 = vmatprep.mubr.msk.f32.mxu1 %vm3615_vm0, %v3616_v1 }
  0x74   :  { %3193 = vmatpush3.bf16.msra.mxu1 %v3793_v12 }
  0x75   :  { %3200 = vmatprep.subr.bf16.mxu1 %v3614_v0 }
 0x136   :  { %v3808_v14 = vpop.f32.mrb[0].mxu0 }
 0x137   :  { %v217_v15 = vpop.f32.mrb[1].mxu0  ;;  %v223_v60 = vadd.f32 %v3808_v14, %v3806_v13 }
 0x138   :  { %v218_v16 = vadd.f32 %v3806_v13, %v217_v15 }
 0x13a   :  { %v354_v17 = vpop.f32.mrb[0].mxu1  ;;  %v3861_v51 = vpop.f32.mrb[2].mxu0 }
 0x13b   :  { %v358_v18 = vadd.f32 %v354_v17, %v218_v16  ;;  %v2894_v19 = vpop.f32.mrb[1].mxu1  ;;  %v3863_v52 = vpop.f32.mrb[3].mxu0 }
 0x13d   :  { %3336 = vtanh.f32 %v358_v18  ;;  %v2686_v21 = vmul.f32 -1.442695, %v358_v18 }
 0x13e   :  { %v3865_v53 = vpop.f32.mrb[4].mxu0 }
 0x13f   :  { %3338 = vpow2.f32 %v2686_v21  ;;  %v3867_v54 = vpop.f32.mrb[5].mxu0 }
 0x142   :  { %v449_v55 = vpop.f32.mrb[2].mxu1  ;;  %v3869_v56 = vpop.f32.mrb[6].mxu0 }
 0x143   :  { %v2905_v57 = vpop.f32.mrb[3].mxu1  ;;  %v3871_v58 = vpop.f32.mrb[7].mxu0 }
 0x147   :  { %v3337_v20 = vpop.eup %3336 }
 0x148   :  { %368 = vrot.lane.b32.xlu0 %v3337_v20, %s3617_s29 }
 0x149   :  { %v3339_v22 = vpop.eup %3338 }
 0x14a   :  { %v362_v23 = vadd.f32 1.0, %v3339_v22 }
 0x14c   :  { %3340 = vrcp.f32 %v362_v23 }
 0x156   :  { %v3341_v24 = vpop.eup %3340 }
 0x157   :  { %v366_v27 = vmul.f32 0.0, %v3341_v24 }
 0x1ba   :  { %v369_v25 = vpop.permute.xlu0 %368 }
 0x1bb   :  { %v371_v26 = vmul.f32 %v3341_v24, %v369_v25 }
 0x1bd   :  { %373 = vrot.lane.b32.xlu0 %v371_v26, %s3618_s30 }
 0x22f   :  { %v374_v28 = vpop.permute.xlu0 %373 }
 0x230   :  { %v3813_v29 = vadd.f32 %v374_v28, %v366_v27 }
 0x232   :  { %3342 = vtanh.f32 %v3813_v29 }
 0x23c   :  { %v3343_v48 = vpop.eup %3342 }
 0x23d   :  { %379 = vrot.lane.b32.xlu1 %v3343_v48, %s3617_s29  ;;  %v228_v48 = vadd.f32 %v3806_v13, %v3863_v52 }
 0x2af   :  { %v380_v49 = vpop.permute.xlu1 %379 }
 0x2b0   :  { %v382_v50 = vmul.f32 %v3341_v24, %v380_v49 }
 0x2b2   :  { %454 = vrot.lane.b32.xlu1 %v382_v50, %s3618_s30 }
 0x324   :  { %v455_v59 = vpop.permute.xlu1 %454 }
 0x325   :  { %2915 = vmatmul.mubr.msk.f32.vlgmr.msra.gmra.mrb[8].mxu0 %vm284_vm2, %v455_v59  ;;  %2926 = vmatmul.mubr.msk.f32.vlgmr.msra.gmra.mrb[4].mxu1 %vm284_vm2, %v455_v59 }
 0x326   :  { %3202 = vmatpush3.bf16.msra.mxu1 %v3819_v33  ;;  %3196 = vmatpush3.bf16.msra.mxu0 %v3824_v37 }
 0x327   :  { %3203 = vmatprep.subr.bf16.mxu1 %v3614_v0  ;;  %3197 = vmatprep.subr.bf16.mxu0 %v3614_v0 }
 0x328   :  { %2947 = vmatprep.mubr.msk.f32.mxu1 %vm3615_vm0, %v3616_v1  ;;  %2936 = vmatprep.mubr.msk.f32.mxu0 %vm3615_vm0, %v3616_v1 }
 0x32a   :  { %3205 = vmatpush3.bf16.msra.mxu1 %v3838_v44  ;;  %3199 = vmatpush3.bf16.msra.mxu0 %v3836_v43 }
 0x32b   :  { %3206 = vmatprep.subr.bf16.mxu0 %v3614_v0  ;;  %3212 = vmatprep.subr.bf16.mxu1 %v3614_v0 }
 0x3f8   :  { %v524_v62 = vpop.f32.mrb[8].mxu0  ;;  %v621_v63 = vpop.f32.mrb[4].mxu1 }
 0x3f9   :  { %v525_v2 = vadd.f32 %v524_v62, %v449_v55  ;;  %v625_v3 = vadd.f32 %v621_v63, %v223_v60  ;;  %v2916_v4 = vpop.f32.mrb[9].mxu0  ;;  %v2927_v5 = vpop.f32.mrb[5].mxu1 }
 0x3fb   :  { %v528_v6 = vadd.f32 %v3892_v61, %v525_v2  ;;  %3344 = vtanh.f32 %v625_v3  ;;  %v2690_v10 = vmul.f32 -1.442695, %v625_v3 }
 0x3fd   :  { %3346 = vtanh.f32 %v528_v6  ;;  %v2688_v11 = vmul.f32 -1.442695, %v528_v6 }
 0x3fe   :  { %3348 = vpow2.f32 %v2690_v10 }
 0x3ff   :  { %3350 = vpow2.f32 %v2688_v11 }
 0x405   :  { %v3345_v7 = vpop.eup %3344 }
 0x406   :  { %635 = vrot.lane.b32.xlu1 %v3345_v7, %s3617_s29 }
 0x407   :  { %v3347_v9 = vpop.eup %3346 }
 0x408   :  { %538 = vrot.lane.b32.xlu0 %v3347_v9, %s3617_s29  ;;  %v3349_v14 = vpop.eup %3348 }
 0x409   :  { %v3351_v15 = vpop.eup %3350  ;;  %v629_v16 = vadd.f32 1.0, %v3349_v14 }
 0x40a   :  { %v532_v17 = vadd.f32 1.0, %v3351_v15 }
 0x40b   :  { %3352 = vrcp.f32 %v629_v16 }
 0x40c   :  { %3354 = vrcp.f32 %v532_v17 }
 0x415   :  { %v3353_v18 = vpop.eup %3352 }
 0x416   :  { %v3355_v21 = vpop.eup %3354  ;;  %v633_v24 = vmul.f32 %v3353_v18, %v3813_v29 }
 0x417   :  { %v536_v27 = vmul.f32 0.0, %v3355_v21 }
 0x478   :  { %v636_v19 = vpop.permute.xlu1 %635 }
 0x479   :  { %v638_v20 = vmul.f32 %v3353_v18, %v636_v19 }
 0x47a   :  { %v539_v22 = vpop.permute.xlu0 %538 }
 0x47b   :  { %v541_v23 = vmul.f32 %v3355_v21, %v539_v22  ;;  %640 = vrot.lane.b32.xlu1 %v638_v20, %s3618_s30 }
 0x47d   :  { %543 = vrot.lane.b32.xlu0 %v541_v23, %s3618_s30 }
 0x4ed   :  { %v641_v25 = vpop.permute.xlu1 %640 }
 0x4ee   :  { %v3900_v26 = vadd.f32 %v641_v25, %v633_v24 }
 0x4ef   :  { %v544_v28 = vpop.permute.xlu0 %543 }
 0x4f0   :  { %3356 = vtanh.f32 %v3900_v26  ;;  %v3903_v30 = vadd.f32 %v544_v28, %v536_v27 }
 0x4f2   :  { %3358 = vtanh.f32 %v3903_v30 }
 0x4fa   :  { %v3357_v31 = vpop.eup %3356 }
 0x4fb   :  { %646 = vrot.lane.b32.xlu1 %v3357_v31, %s3617_s29  ;;  %v233_v31 = vadd.f32 %v3861_v51, %v3806_v13 }
 0x4fc   :  { %v3359_v32 = vpop.eup %3358 }
 0x4fd   :  { %549 = vrot.lane.b32.xlu0 %v3359_v32, %s3617_s29 }
 0x56d   :  { %v647_v34 = vpop.permute.xlu1 %646 }
 0x56e   :  { %v649_v35 = vmul.f32 %v3353_v18, %v647_v34 }
 0x56f   :  { %v550_v29 = vpop.permute.xlu0 %549 }
 0x570   :  { %v552_v36 = vmul.f32 %v3355_v21, %v550_v29  ;;  %726 = vrot.lane.b32.xlu1 %v649_v35, %s3618_s30 }
 0x572   :  { %651 = vrot.lane.b32.xlu0 %v552_v36, %s3618_s30 }
 0x5e2   :  { %v727_v38 = vpop.permute.xlu1 %726 }
 0x5e3   :  { %2948 = vmatmul.mubr.msk.f32.vlgmr.msra.gmra.mrb[6].mxu1 %vm284_vm2, %v727_v38 }
 0x5e4   :  { %v652_v39 = vpop.permute.xlu0 %651  ;;  %3214 = vmatpush3.bf16.msra.mxu1 %v3824_v37  ;;  %2969 = vmatprep.mubr.msk.f32.mxu1 %vm3615_vm0, %v3616_v1 }
 0x5e5   :  { %2937 = vmatmul.mubr.msk.f32.vlgmr.msra.gmra.mrb[10].mxu0 %vm284_vm2, %v652_v39  ;;  %3215 = vmatprep.subr.bf16.mxu1 %v3614_v0 }
 0x5e6   :  { %3208 = vmatpush3.bf16.msra.mxu0 %v3783_v8  ;;  %2958 = vmatprep.mubr.msk.f32.mxu0 %vm3615_vm0, %v3616_v1 }
 0x5e7   :  { %3209 = vmatprep.subr.bf16.mxu0 %v3614_v0 }
 0x5e8   :  { %3217 = vmatpush3.bf16.msra.mxu1 %v3836_v43 }
 0x5e9   :  { %3224 = vmatprep.subr.bf16.mxu1 %v3614_v0 }
 0x5ea   :  { %3211 = vmatpush3.bf16.msra.mxu0 %v3793_v12 }
 0x5eb   :  { %3218 = vmatprep.subr.bf16.mxu0 %v3614_v0 }
 0x5ed   :  { %2959 = vmatmul.mubr.msk.f32.vlgmr.msra.gmra.mrb[12].mxu0 %vm284_vm2, %v727_v38 }
 0x5ee   :  { %3220 = vmatpush3.bf16.msra.mxu0 %v3819_v33  ;;  %2980 = vmatprep.mubr.msk.f32.mxu0 %vm3615_vm0, %v3616_v1 }
 0x5ef   :  { %3221 = vmatprep.subr.bf16.mxu0 %v3614_v0 }
 0x5f2   :  { %3223 = vmatpush3.bf16.msra.mxu0 %v3838_v44 }
 0x5f3   :  { %3230 = vmatprep.subr.bf16.mxu0 %v3614_v0 }
 0x6b6   :  { %v796_v40 = vpop.f32.mrb[6].mxu1 }
 0x6b7   :  { %v2949_v41 = vpop.f32.mrb[7].mxu1 }
 0x6b8   :  { %v721_v42 = vpop.f32.mrb[10].mxu0 }
 0x6b9   :  { %v797_v45 = vadd.f32 %v796_v40, %v721_v42  ;;  %v2938_v46 = vpop.f32.mrb[11].mxu0 }
 0x6bb   :  { %v800_v47 = vadd.f32 %v3892_v61, %v797_v45 }
 0x6bd   :  { %3360 = vtanh.f32 %v800_v47  ;;  %v2693_v60 = vmul.f32 -1.442695, %v800_v47 }
 0x6c0   :  { %v893_v49 = vpop.f32.mrb[12].mxu0 }
 0x6c1   :  { %v897_v50 = vadd.f32 %v893_v49, %v228_v48  ;;  %v2960_v55 = vpop.f32.mrb[13].mxu0 }
 0x6c3   :  { %3362 = vtanh.f32 %v897_v50  ;;  %v2695_v62 = vmul.f32 -1.442695, %v897_v50 }
 0x6c4   :  { %3364 = vpow2.f32 %v2693_v60 }
 0x6c5   :  { %3366 = vpow2.f32 %v2695_v62 }
 0x6c7   :  { %v3361_v57 = vpop.eup %3360 }
 0x6c8   :  { %810 = vrot.lane.b32.xlu0 %v3361_v57, %s3617_s29 }
 0x6cd   :  { %v3363_v59 = vpop.eup %3362 }
 0x6ce   :  { %907 = vrot.lane.b32.xlu1 %v3363_v59, %s3617_s29  ;;  %v3365_v63 = vpop.eup %3364 }
 0x6cf   :  { %v804_v2 = vadd.f32 1.0, %v3365_v63  ;;  %v3367_v3 = vpop.eup %3366 }
 0x6d0   :  { %v901_v4 = vadd.f32 1.0, %v3367_v3 }
 0x6d1   :  { %3368 = vrcp.f32 %v804_v2 }
 0x6d2   :  { %3370 = vrcp.f32 %v901_v4 }
 0x6db   :  { %v3369_v52 = vpop.eup %3368 }
 0x6dc   :  { %v3371_v7 = vpop.eup %3370  ;;  %v808_v11 = vmul.f32 %v3369_v52, %v3903_v30 }
 0x6dd   :  { %v905_v16 = vmul.f32 %v3371_v7, %v3900_v26 }
 0x73a   :  { %v811_v5 = vpop.permute.xlu0 %810 }
 0x73b   :  { %v813_v6 = vmul.f32 %v3369_v52, %v811_v5 }
 0x73d   :  { %815 = vrot.lane.b32.xlu0 %v813_v6, %s3618_s30 }
 0x740   :  { %v908_v9 = vpop.permute.xlu1 %907 }
 0x741   :  { %v910_v10 = vmul.f32 %v3371_v7, %v908_v9 }
 0x743   :  { %912 = vrot.lane.b32.xlu1 %v910_v10, %s3618_s30 }
 0x7af   :  { %v816_v14 = vpop.permute.xlu0 %815 }
 0x7b0   :  { %v3939_v15 = vadd.f32 %v816_v14, %v808_v11 }
 0x7b2   :  { %3372 = vtanh.f32 %v3939_v15 }
 0x7b5   :  { %v913_v17 = vpop.permute.xlu1 %912 }
 0x7b6   :  { %v3943_v18 = vadd.f32 %v913_v17, %v905_v16 }
 0x7b8   :  { %3374 = vtanh.f32 %v3943_v18 }
 0x7bc   :  { %v3373_v19 = vpop.eup %3372 }
 0x7bd   :  { %821 = vrot.lane.b32.xlu0 %v3373_v19, %s3617_s29 }
 0x7c2   :  { %v3375_v20 = vpop.eup %3374 }
 0x7c3   :  { %918 = vrot.lane.b32.xlu1 %v3375_v20, %s3617_s29 }
 0x82f   :  { %v822_v21 = vpop.permute.xlu0 %821 }
 0x830   :  { %v824_v22 = vmul.f32 %v3369_v52, %v822_v21  ;;  %v238_v21 = vadd.f32 %v3806_v13, %v3867_v54 }
 0x832   :  { %923 = vrot.lane.b32.xlu0 %v824_v22, %s3618_s30 }
 0x835   :  { %v919_v23 = vpop.permute.xlu1 %918 }
 0x836   :  { %v921_v24 = vmul.f32 %v3371_v7, %v919_v23 }
 0x838   :  { %998 = vrot.lane.b32.xlu1 %v921_v24, %s3618_s30 }
 0x8a4   :  { %v924_v25 = vpop.permute.xlu0 %923 }
 0x8a5   :  { %2970 = vmatmul.mubr.msk.f32.vlgmr.msra.gmra.mrb[8].mxu1 %vm284_vm2, %v924_v25 }
 0x8a6   :  { %3226 = vmatpush3.bf16.msra.mxu1 %v3783_v8  ;;  %2991 = vmatprep.mubr.msk.f32.mxu1 %vm3615_vm0, %v3616_v1 }
 0x8a7   :  { %3227 = vmatprep.subr.bf16.mxu1 %v3614_v0 }
 0x8aa   :  { %3229 = vmatpush3.bf16.msra.mxu1 %v3793_v12  ;;  %v999_v26 = vpop.permute.xlu1 %998 }
 0x8ab   :  { %2981 = vmatmul.mubr.msk.f32.vlgmr.msra.gmra.mrb[14].mxu0 %vm284_vm2, %v999_v26  ;;  %3236 = vmatprep.subr.bf16.mxu1 %v3614_v0 }
 0x8ac   :  { %3232 = vmatpush3.bf16.msra.mxu0 %v3824_v37  ;;  %3002 = vmatprep.mubr.msk.f32.mxu0 %vm3615_vm0, %v3616_v1 }
 0x8ad   :  { %2992 = vmatmul.mubr.msk.f32.vlgmr.msra.gmra.mrb[10].mxu1 %vm284_vm2, %v999_v26  ;;  %3233 = vmatprep.subr.bf16.mxu0 %v3614_v0 }
 0x8ae   :  { %3238 = vmatpush3.bf16.msra.mxu1 %v3819_v33  ;;  %3013 = vmatprep.mubr.msk.f32.mxu1 %vm3615_vm0, %v3616_v1 }
 0x8af   :  { %3239 = vmatprep.subr.bf16.mxu1 %v3614_v0 }
 0x8b0   :  { %3235 = vmatpush3.bf16.msra.mxu0 %v3836_v43 }
 0x8b1   :  { %3242 = vmatprep.subr.bf16.mxu0 %v3614_v0 }
 0x8b2   :  { %3241 = vmatpush3.bf16.msra.mxu1 %v3838_v44 }
 0x8b3   :  { %3248 = vmatprep.subr.bf16.mxu1 %v3614_v0 }
 0x978   :  { %v993_v27 = vpop.f32.mrb[8].mxu1 }
 0x979   :  { %v2971_v28 = vpop.f32.mrb[9].mxu1 }
 0x97e   :  { %v1068_v30 = vpop.f32.mrb[14].mxu0 }
 0x97f   :  { %v1069_v32 = vadd.f32 %v1068_v30, %v993_v27  ;;  %v2982_v34 = vpop.f32.mrb[15].mxu0 }
 0x980   :  { %v1165_v35 = vpop.f32.mrb[10].mxu1 }
 0x981   :  { %v1072_v29 = vadd.f32 %v3892_v61, %v1069_v32  ;;  %v1169_v36 = vadd.f32 %v1165_v35, %v233_v31  ;;  %v2993_v38 = vpop.f32.mrb[11].mxu1 }
 0x983   :  { %3376 = vtanh.f32 %v1072_v29  ;;  %v2698_v41 = vmul.f32 -1.442695, %v1072_v29  ;;  %v2700_v42 = vmul.f32 -1.442695, %v1169_v36 }
 0x984   :  { %3378 = vtanh.f32 %v1169_v36 }
 0x985   :  { %3380 = vpow2.f32 %v2698_v41 }
 0x986   :  { %3382 = vpow2.f32 %v2700_v42 }
 0x98d   :  { %v3377_v39 = vpop.eup %3376 }
 0x98e   :  { %v3379_v40 = vpop.eup %3378  ;;  %1082 = vrot.lane.b32.xlu0 %v3377_v39, %s3617_s29 }
 0x98f   :  { %1179 = vrot.lane.b32.xlu1 %v3379_v40, %s3617_s29  ;;  %v3381_v51 = vpop.eup %3380 }
 0x990   :  { %v3383_v45 = vpop.eup %3382  ;;  %v1076_v46 = vadd.f32 1.0, %v3381_v51 }
 0x991   :  { %v1173_v47 = vadd.f32 1.0, %v3383_v45 }
 0x992   :  { %3384 = vrcp.f32 %v1076_v46 }
 0x993   :  { %3386 = vrcp.f32 %v1173_v47 }
 0x99c   :  { %v3385_v48 = vpop.eup %3384 }
 0x99d   :  { %v3387_v50 = vpop.eup %3386  ;;  %v1080_v60 = vmul.f32 %v3385_v48, %v3939_v15 }
 0x99e   :  { %v1177_v62 = vmul.f32 %v3387_v50, %v3943_v18 }
 0xa00   :  { %v1083_v49 = vpop.permute.xlu0 %1082 }
 0xa01   :  { %v1180_v55 = vpop.permute.xlu1 %1179  ;;  %v1085_v57 = vmul.f32 %v3385_v48, %v1083_v49 }
 0xa02   :  { %v1182_v59 = vmul.f32 %v3387_v50, %v1180_v55 }
 0xa03   :  { %1087 = vrot.lane.b32.xlu0 %v1085_v57, %s3618_s30 }
 0xa04   :  { %1184 = vrot.lane.b32.xlu1 %v1182_v59, %s3618_s30 }
 0xa75   :  { %v1088_v63 = vpop.permute.xlu0 %1087 }
 0xa76   :  { %v1185_v2 = vpop.permute.xlu1 %1184  ;;  %v3980_v3 = vadd.f32 %v1088_v63, %v1080_v60 }
 0xa77   :  { %v3982_v4 = vadd.f32 %v1185_v2, %v1177_v62 }
 0xa78   :  { %3388 = vtanh.f32 %v3980_v3 }
 0xa79   :  { %3390 = vtanh.f32 %v3982_v4 }
 0xa82   :  { %v3389_v52 = vpop.eup %3388 }
 0xa83   :  { %v3391_v5 = vpop.eup %3390  ;;  %1093 = vrot.lane.b32.xlu0 %v3389_v52, %s3617_s29  ;;  %v243_v52 = vadd.f32 %v3865_v53, %v3806_v13 }
 0xa84   :  { %1190 = vrot.lane.b32.xlu1 %v3391_v5, %s3617_s29 }
 0xaf5   :  { %v1094_v6 = vpop.permute.xlu0 %1093 }
 0xaf6   :  { %v1191_v7 = vpop.permute.xlu1 %1190  ;;  %v1096_v9 = vmul.f32 %v3385_v48, %v1094_v6 }
 0xaf7   :  { %v1193_v10 = vmul.f32 %v3387_v50, %v1191_v7 }
 0xaf8   :  { %1195 = vrot.lane.b32.xlu0 %v1096_v9, %s3618_s30 }
 0xaf9   :  { %1270 = vrot.lane.b32.xlu1 %v1193_v10, %s3618_s30 }
 0xb6a   :  { %v1196_v11 = vpop.permute.xlu0 %1195 }
 0xb6b   :  { %v1271_v14 = vpop.permute.xlu1 %1270  ;;  %3003 = vmatmul.mubr.msk.f32.vlgmr.msra.gmra.mrb[16].mxu0 %vm284_vm2, %v1196_v11 }
 0xb6c   :  { %3014 = vmatmul.mubr.msk.f32.vlgmr.msra.gmra.mrb[12].mxu1 %vm284_vm2, %v1271_v14  ;;  %3244 = vmatpush3.bf16.msra.mxu0 %v3783_v8 }
 0xb6d   :  { %3245 = vmatprep.subr.bf16.mxu0 %v3614_v0  ;;  %3024 = vmatprep.mubr.msk.f32.mxu0 %vm3615_vm0, %v3616_v1 }
 0xb6e   :  { %3250 = vmatpush3.bf16.msra.mxu1 %v3824_v37  ;;  %3035 = vmatprep.mubr.msk.f32.mxu1 %vm3615_vm0, %v3616_v1 }
 0xb6f   :  { %3251 = vmatprep.subr.bf16.mxu1 %v3614_v0 }
 0xb70   :  { %3247 = vmatpush3.bf16.msra.mxu0 %v3793_v12 }
 0xb71   :  { %3254 = vmatprep.subr.bf16.mxu0 %v3614_v0 }
 0xb72   :  { %3253 = vmatpush3.bf16.msra.mxu1 %v3836_v43 }
 0xb73   :  { %3025 = vmatmul.mubr.msk.f32.vlgmr.msra.gmra.mrb[18].mxu0 %vm284_vm2, %v1271_v14  ;;  %3260 = vmatprep.subr.bf16.mxu1 %v3614_v0 }
 0xb74   :  { %3256 = vmatpush3.bf16.msra.mxu0 %v3819_v33  ;;  %3046 = vmatprep.mubr.msk.f32.mxu0 %vm3615_vm0, %v3616_v1 }
 0xb75   :  { %3257 = vmatprep.subr.bf16.mxu0 %v3614_v0 }
 0xb78   :  { %3259 = vmatpush3.bf16.msra.mxu0 %v3838_v44 }
 0xb79   :  { %3266 = vmatprep.subr.bf16.mxu0 %v3614_v0 }
 0xc3e   :  { %v1265_v15 = vpop.f32.mrb[16].mxu0 }
 0xc3f   :  { %v1340_v16 = vpop.f32.mrb[12].mxu1  ;;  %v3004_v17 = vpop.f32.mrb[17].mxu0 }
 0xc40   :  { %v1341_v18 = vadd.f32 %v1340_v16, %v1265_v15  ;;  %v3015_v19 = vpop.f32.mrb[13].mxu1 }
 0xc42   :  { %v1344_v20 = vadd.f32 %v3892_v61, %v1341_v18 }
 0xc44   :  { %3392 = vtanh.f32 %v1344_v20  ;;  %v2703_v27 = vmul.f32 -1.442695, %v1344_v20 }
 0xc46   :  { %v1437_v22 = vpop.f32.mrb[18].mxu0 }
 0xc47   :  { %v1441_v23 = vadd.f32 %v1437_v22, %v238_v21  ;;  %v3026_v24 = vpop.f32.mrb[19].mxu0 }
 0xc49   :  { %3394 = vtanh.f32 %v1441_v23  ;;  %v2705_v28 = vmul.f32 -1.442695, %v1441_v23 }
 0xc4a   :  { %3396 = vpow2.f32 %v2703_v27 }
 0xc4b   :  { %3398 = vpow2.f32 %v2705_v28 }
 0xc4e   :  { %v3393_v25 = vpop.eup %3392 }
 0xc4f   :  { %1354 = vrot.lane.b32.xlu0 %v3393_v25, %s3617_s29 }
 0xc53   :  { %v3395_v26 = vpop.eup %3394 }
 0xc54   :  { %1451 = vrot.lane.b32.xlu1 %v3395_v26, %s3617_s29  ;;  %v3397_v30 = vpop.eup %3396 }
 0xc55   :  { %v1348_v31 = vadd.f32 1.0, %v3397_v30  ;;  %v3399_v32 = vpop.eup %3398 }
 0xc56   :  { %v1445_v34 = vadd.f32 1.0, %v3399_v32 }
 0xc57   :  { %3400 = vrcp.f32 %v1348_v31 }
 0xc58   :  { %3402 = vrcp.f32 %v1445_v34 }
 0xc61   :  { %v3401_v54 = vpop.eup %3400 }
 0xc62   :  { %v3403_v36 = vpop.eup %3402  ;;  %v1352_v40 = vmul.f32 %v3401_v54, %v3980_v3 }
 0xc63   :  { %v1449_v51 = vmul.f32 %v3403_v36, %v3982_v4 }
 0xcc1   :  { %v1355_v35 = vpop.permute.xlu0 %1354 }
 0xcc2   :  { %v1357_v29 = vmul.f32 %v3401_v54, %v1355_v35 }
 0xcc4   :  { %1359 = vrot.lane.b32.xlu0 %v1357_v29, %s3618_s30 }
 0xcc6   :  { %v1452_v38 = vpop.permute.xlu1 %1451 }
 0xcc7   :  { %v1454_v39 = vmul.f32 %v3403_v36, %v1452_v38 }
 0xcc9   :  { %1456 = vrot.lane.b32.xlu1 %v1454_v39, %s3618_s30 }
 0xd36   :  { %v1360_v41 = vpop.permute.xlu0 %1359 }
 0xd37   :  { %v4019_v42 = vadd.f32 %v1360_v41, %v1352_v40 }
 0xd39   :  { %3404 = vtanh.f32 %v4019_v42 }
 0xd3b   :  { %v1457_v45 = vpop.permute.xlu1 %1456 }
 0xd3c   :  { %v4023_v46 = vadd.f32 %v1457_v45, %v1449_v51 }
 0xd3e   :  { %3406 = vtanh.f32 %v4023_v46 }
 0xd43   :  { %v3405_v47 = vpop.eup %3404 }
 0xd44   :  { %1365 = vrot.lane.b32.xlu0 %v3405_v47, %s3617_s29  ;;  %v248_v47 = vadd.f32 %v3806_v13, %v3871_v58 }
 0xd48   :  { %v3407_v48 = vpop.eup %3406 }
 0xd49   :  { %1462 = vrot.lane.b32.xlu1 %v3407_v48, %s3617_s29 }
 0xdb6   :  { %v1366_v49 = vpop.permute.xlu0 %1365 }
 0xdb7   :  { %v1368_v50 = vmul.f32 %v3401_v54, %v1366_v49 }
 0xdb9   :  { %1467 = vrot.lane.b32.xlu0 %v1368_v50, %s3618_s30 }
 0xdbb   :  { %v1463_v55 = vpop.permute.xlu1 %1462 }
 0xdbc   :  { %v1465_v57 = vmul.f32 %v3403_v36, %v1463_v55 }
 0xdbe   :  { %1542 = vrot.lane.b32.xlu1 %v1465_v57, %s3618_s30 }
 0xe2b   :  { %v1468_v59 = vpop.permute.xlu0 %1467 }
 0xe2c   :  { %3036 = vmatmul.mubr.msk.f32.vlgmr.msra.gmra.mrb[14].mxu1 %vm284_vm2, %v1468_v59 }
 0xe2d   :  { %3262 = vmatpush3.bf16.msra.mxu1 %v3783_v8  ;;  %3057 = vmatprep.mubr.msk.f32.mxu1 %vm3615_vm0, %v3616_v1 }
 0xe2e   :  { %3263 = vmatprep.subr.bf16.mxu1 %v3614_v0 }
 0xe30   :  { %v1543_v60 = vpop.permute.xlu1 %1542 }
 0xe31   :  { %3265 = vmatpush3.bf16.msra.mxu1 %v3793_v12  ;;  %3047 = vmatmul.mubr.msk.f32.vlgmr.msra.gmra.mrb[20].mxu0 %vm284_vm2, %v1543_v60 }
 0xe32   :  { %3268 = vmatpush3.bf16.msra.mxu0 %v3824_v37  ;;  %3272 = vmatprep.subr.bf16.mxu1 %v3614_v0 }
 0xe33   :  { %3269 = vmatprep.subr.bf16.mxu0 %v3614_v0  ;;  %3068 = vmatprep.mubr.msk.f32.mxu0 %vm3615_vm0, %v3616_v1 }
 0xe34   :  { %3058 = vmatmul.mubr.msk.f32.vlgmr.msra.gmra.mrb[16].mxu1 %vm284_vm2, %v1543_v60 }
 0xe35   :  { %3274 = vmatpush3.bf16.msra.mxu1 %v3819_v33  ;;  %3079 = vmatprep.mubr.msk.f32.mxu1 %vm3615_vm0, %v3616_v1 }
 0xe36   :  { %3271 = vmatpush3.bf16.msra.mxu0 %v3836_v43  ;;  %3275 = vmatprep.subr.bf16.mxu1 %v3614_v0 }
 0xe37   :  { %3278 = vmatprep.subr.bf16.mxu0 %v3614_v0 }
 0xe39   :  { %3277 = vmatpush3.bf16.msra.mxu1 %v3838_v44 }
 0xe3a   :  { %3284 = vmatprep.subr.bf16.mxu1 %v3614_v0 }
 0xeff   :  { %v1537_v62 = vpop.f32.mrb[14].mxu1 }
 0xf00   :  { %v3037_v63 = vpop.f32.mrb[15].mxu1 }
 0xf04   :  { %v1612_v2 = vpop.f32.mrb[20].mxu0 }
 0xf05   :  { %v1613_v3 = vadd.f32 %v1612_v2, %v1537_v62  ;;  %v3048_v4 = vpop.f32.mrb[21].mxu0 }
 0xf07   :  { %v1616_v5 = vadd.f32 %v3892_v61, %v1613_v3  ;;  %v1709_v6 = vpop.f32.mrb[16].mxu1 }
 0xf08   :  { %v1713_v7 = vadd.f32 %v1709_v6, %v243_v52  ;;  %v3059_v9 = vpop.f32.mrb[17].mxu1 }
 0xf09   :  { %3408 = vtanh.f32 %v1616_v5  ;;  %v2708_v14 = vmul.f32 -1.442695, %v1616_v5 }
 0xf0a   :  { %3410 = vtanh.f32 %v1713_v7  ;;  %v2710_v15 = vmul.f32 -1.442695, %v1713_v7 }
 0xf0b   :  { %3412 = vpow2.f32 %v2708_v14 }
 0xf0c   :  { %3414 = vpow2.f32 %v2710_v15 }
 0xf13   :  { %v3409_v10 = vpop.eup %3408 }
 0xf14   :  { %v3411_v11 = vpop.eup %3410  ;;  %1626 = vrot.lane.b32.xlu0 %v3409_v10, %s3617_s29 }
 0xf15   :  { %1723 = vrot.lane.b32.xlu1 %v3411_v11, %s3617_s29  ;;  %v3413_v16 = vpop.eup %3412 }
 0xf16   :  { %v3415_v17 = vpop.eup %3414  ;;  %v1620_v53 = vadd.f32 1.0, %v3413_v16 }
 0xf17   :  { %v1717_v18 = vadd.f32 1.0, %v3415_v17 }
 0xf18   :  { %3416 = vrcp.f32 %v1620_v53 }
 0xf19   :  { %3418 = vrcp.f32 %v1717_v18 }
 0xf22   :  { %v3417_v19 = vpop.eup %3416 }
 0xf23   :  { %v3419_v21 = vpop.eup %3418  ;;  %v1624_v25 = vmul.f32 %v3417_v19, %v4019_v42 }
 0xf24   :  { %v1721_v26 = vmul.f32 %v3419_v21, %v4023_v46 }
 0xf86   :  { %v1627_v20 = vpop.permute.xlu0 %1626 }
 0xf87   :  { %v1724_v22 = vpop.permute.xlu1 %1723  ;;  %v1629_v23 = vmul.f32 %v3417_v19, %v1627_v20 }
 0xf88   :  { %v1726_v24 = vmul.f32 %v3419_v21, %v1724_v22 }
 0xf89   :  { %1631 = vrot.lane.b32.xlu0 %v1629_v23, %s3618_s30 }
 0xf8a   :  { %1728 = vrot.lane.b32.xlu1 %v1726_v24, %s3618_s30 }
 0xffb   :  { %v1632_v27 = vpop.permute.xlu0 %1631 }
 0xffc   :  { %v1729_v28 = vpop.permute.xlu1 %1728  ;;  %v4060_v30 = vadd.f32 %v1632_v27, %v1624_v25 }
 0xffd   :  { %v4062_v31 = vadd.f32 %v1729_v28, %v1721_v26 }
 0xffe   :  { %3420 = vtanh.f32 %v4060_v30 }
 0xfff   :  { %3422 = vtanh.f32 %v4062_v31 }
0x1008   :  { %v3421_v32 = vpop.eup %3420 }
0x1009   :  { %v3423_v34 = vpop.eup %3422  ;;  %1637 = vrot.lane.b32.xlu0 %v3421_v32, %s3617_s29 }
0x100a   :  { %1734 = vrot.lane.b32.xlu1 %v3423_v34, %s3617_s29 }
0x107b   :  { %v1638_v54 = vpop.permute.xlu0 %1637 }
0x107c   :  { %v1735_v35 = vpop.permute.xlu1 %1734  ;;  %v1640_v29 = vmul.f32 %v3417_v19, %v1638_v54 }
0x107d   :  { %v1737_v36 = vmul.f32 %v3419_v21, %v1735_v35 }
0x107e   :  { %1739 = vrot.lane.b32.xlu0 %v1640_v29, %s3618_s30 }
0x107f   :  { %1814 = vrot.lane.b32.xlu1 %v1737_v36, %s3618_s30 }
0x10f0   :  { %v1740_v38 = vpop.permute.xlu0 %1739 }
0x10f1   :  { %v1815_v39 = vpop.permute.xlu1 %1814  ;;  %3069 = vmatmul.mubr.msk.f32.vlgmr.msra.gmra.mrb[22].mxu0 %vm284_vm2, %v1740_v38 }
0x10f2   :  { %3080 = vmatmul.mubr.msk.f32.vlgmr.msra.gmra.mrb[18].mxu1 %vm284_vm2, %v1815_v39  ;;  %3280 = vmatpush3.bf16.msra.mxu0 %v3783_v8 }
0x10f3   :  { %3281 = vmatprep.subr.bf16.mxu0 %v3614_v0  ;;  %3090 = vmatprep.mubr.msk.f32.mxu0 %vm3615_vm0, %v3616_v1 }
0x10f4   :  { %3286 = vmatpush3.bf16.msra.mxu1 %v3824_v37  ;;  %3101 = vmatprep.mubr.msk.f32.mxu1 %vm3615_vm0, %v3616_v1 }
0x10f5   :  { %3287 = vmatprep.subr.bf16.mxu1 %v3614_v0 }
0x10f6   :  { %3283 = vmatpush3.bf16.msra.mxu0 %v3793_v12 }
0x10f7   :  { %3290 = vmatprep.subr.bf16.mxu0 %v3614_v0 }
0x10f8   :  { %3289 = vmatpush3.bf16.msra.mxu1 %v3836_v43 }
0x10f9   :  { %3091 = vmatmul.mubr.msk.f32.vlgmr.msra.gmra.mrb[24].mxu0 %vm284_vm2, %v1815_v39  ;;  %3296 = vmatprep.subr.bf16.mxu1 %v3614_v0 }
0x10fa   :  { %3292 = vmatpush3.bf16.msra.mxu0 %v3819_v33  ;;  %3112 = vmatprep.mubr.msk.f32.mxu0 %vm3615_vm0, %v3616_v1 }
0x10fb   :  { %3293 = vmatprep.subr.bf16.mxu0 %v3614_v0 }
0x10fe   :  { %3295 = vmatpush3.bf16.msra.mxu0 %v3838_v44 }
0x10ff   :  { %3302 = vmatprep.subr.bf16.mxu0 %v3614_v0 }
0x11c4   :  { %v1809_v40 = vpop.f32.mrb[22].mxu0 }
0x11c5   :  { %v1884_v41 = vpop.f32.mrb[18].mxu1  ;;  %v3070_v42 = vpop.f32.mrb[23].mxu0 }
0x11c6   :  { %v1885_v51 = vadd.f32 %v1884_v41, %v1809_v40  ;;  %v3081_v45 = vpop.f32.mrb[19].mxu1 }
0x11c8   :  { %v1888_v46 = vadd.f32 %v3892_v61, %v1885_v51 }
0x11ca   :  { %3424 = vtanh.f32 %v1888_v46  ;;  %v2713_v59 = vmul.f32 -1.442695, %v1888_v46 }
0x11cc   :  { %v1981_v48 = vpop.f32.mrb[24].mxu0 }
0x11cd   :  { %v1985_v49 = vadd.f32 %v1981_v48, %v248_v47  ;;  %v3092_v50 = vpop.f32.mrb[25].mxu0 }
0x11cf   :  { %3426 = vtanh.f32 %v1985_v49  ;;  %v2715_v60 = vmul.f32 -1.442695, %v1985_v49 }
0x11d0   :  { %3428 = vpow2.f32 %v2713_v59 }
0x11d1   :  { %3430 = vpow2.f32 %v2715_v60 }
0x11d4   :  { %v3425_v55 = vpop.eup %3424 }
0x11d5   :  { %1898 = vrot.lane.b32.xlu0 %v3425_v55, %s3617_s29 }
0x11d9   :  { %v3427_v57 = vpop.eup %3426 }
0x11da   :  { %1995 = vrot.lane.b32.xlu1 %v3427_v57, %s3617_s29  ;;  %v3429_v62 = vpop.eup %3428 }
0x11db   :  { %v1892_v63 = vadd.f32 1.0, %v3429_v62  ;;  %v3431_v2 = vpop.eup %3430 }
0x11dc   :  { %v1989_v3 = vadd.f32 1.0, %v3431_v2 }
0x11dd   :  { %3432 = vrcp.f32 %v1892_v63 }
0x11de   :  { %3434 = vrcp.f32 %v1989_v3 }
0x11e7   :  { %v3433_v13 = vpop.eup %3432 }
0x11e8   :  { %v3435_v52 = vpop.eup %3434  ;;  %v1896_v7 = vmul.f32 %v3433_v13, %v4060_v30 }
0x11e9   :  { %v1993_v11 = vmul.f32 %v3435_v52, %v4062_v31 }
0x1247   :  { %v1899_v58 = vpop.permute.xlu0 %1898 }
0x1248   :  { %v1901_v4 = vmul.f32 %v3433_v13, %v1899_v58 }
0x124a   :  { %1903 = vrot.lane.b32.xlu0 %v1901_v4, %s3618_s30 }
0x124c   :  { %v1996_v5 = vpop.permute.xlu1 %1995 }
0x124d   :  { %v1998_v6 = vmul.f32 %v3435_v52, %v1996_v5 }
0x124f   :  { %2000 = vrot.lane.b32.xlu1 %v1998_v6, %s3618_s30 }
0x12bc   :  { %v1904_v9 = vpop.permute.xlu0 %1903 }
0x12bd   :  { %v4099_v10 = vadd.f32 %v1904_v9, %v1896_v7 }
0x12bf   :  { %3436 = vtanh.f32 %v4099_v10 }
0x12c1   :  { %v2001_v14 = vpop.permute.xlu1 %2000 }
0x12c2   :  { %v4103_v15 = vadd.f32 %v2001_v14, %v1993_v11 }
0x12c4   :  { %3438 = vtanh.f32 %v4103_v15 }
0x12c9   :  { %v3437_v16 = vpop.eup %3436 }
0x12ca   :  { %1909 = vrot.lane.b32.xlu0 %v3437_v16, %s3617_s29 }
0x12ce   :  { %v3439_v17 = vpop.eup %3438 }
0x12cf   :  { %2006 = vrot.lane.b32.xlu1 %v3439_v17, %s3617_s29  ;;  %v2458_v17 = vld [vmem:[%s4205_s7 + $0x8] sm:$0xff] }
0x133c   :  { %v1910_v53 = vpop.permute.xlu0 %1909 }
0x133d   :  { %v1912_v18 = vmul.f32 %v3433_v13, %v1910_v53  ;;  %v2459_v53 = vld [vmem:[%s4205_s7 + $0x10] sm:$0xff] }
0x133f   :  { %2011 = vrot.lane.b32.xlu0 %v1912_v18, %s3618_s30 }
0x1341   :  { %v2007_v19 = vpop.permute.xlu1 %2006 }
0x1342   :  { %v2009_v20 = vmul.f32 %v3435_v52, %v2007_v19  ;;  %v2460_v19 = vld [vmem:[%s4205_s7 + $0x18] sm:$0xff] }
0x1344   :  { %2086 = vrot.lane.b32.xlu1 %v2009_v20, %s3618_s30  ;;  %v3318_v20 = vpack.c.bf16 %v2460_v19, %v2459_v53 }
0x13b1   :  { %v2012_v21 = vpop.permute.xlu0 %2011 }
0x13b2   :  { %3102 = vmatmul.mubr.msk.f32.vlgmr.msra.gmra.mrb[20].mxu1 %vm284_vm2, %v2012_v21 }
0x13b3   :  { %3298 = vmatpush3.bf16.msra.mxu1 %v3783_v8  ;;  %3123 = vmatprep.mubr.msk.f32.mxu1 %vm3615_vm0, %v3616_v1 }
0x13b4   :  { %3299 = vmatprep.subr.bf16.mxu1 %v3614_v0 }
0x13b6   :  { %v2087_v22 = vpop.permute.xlu1 %2086 }
0x13b7   :  { %3301 = vmatpush3.bf16.msra.mxu1 %v3793_v12  ;;  %3113 = vmatmul.mubr.msk.f32.vlgmr.msra.gmra.mrb[26].mxu0 %vm284_vm2, %v2087_v22 }
0x13b8   :  { %3308 = vmatprep.subr.bf16.mxu1 %v3614_v0  ;;  %3304 = vmatpush3.bf16.msra.mxu0 %v3824_v37 }
0x13b9   :  { %3305 = vmatprep.subr.bf16.mxu0 %v3614_v0  ;;  %3134 = vmatprep.mubr.msk.f32.mxu0 %vm3615_vm0, %v3616_v1 }
0x13ba   :  { %3124 = vmatmul.mubr.msk.f32.vlgmr.msra.gmra.mrb[22].mxu1 %vm284_vm2, %v2087_v22 }
0x13bb   :  { %3310 = vmatpush3.bf16.msra.mxu1 %v3819_v33  ;;  %3145 = vmatprep.mubr.msk.f32.mxu1 %vm3615_vm0, %v3616_v1  ;;  %v3466_v33 = vld [vmem:[%s4201_s3] ss:$0 sm:$0xff] }
0x13bc   :  { %3311 = vmatprep.subr.bf16.mxu1 %v3614_v0  ;;  %3307 = vmatpush3.bf16.msra.mxu0 %v3836_v43  ;;  %v253_v25 = vadd.f32 %v3466_v33, %v3869_v56 }
0x13bd   :  { %3314 = vmatprep.subr.bf16.mxu0 %v3614_v0 }
0x13bf   :  { %3313 = vmatpush3.bf16.msra.mxu1 %v3838_v44 }
0x13c0   :  { %3320 = vmatprep.subr.bf16.mxu1 %v3614_v0 }
0x1485   :  { %v2081_v8 = vpop.f32.mrb[20].mxu1 }
0x1486   :  { %v3103_v12 = vpop.f32.mrb[21].mxu1 }
0x148a   :  { %v2156_v37 = vpop.f32.mrb[26].mxu0 }
0x148b   :  { %v2157_v23 = vadd.f32 %v2156_v37, %v2081_v8  ;;  %v3114_v24 = vpop.f32.mrb[27].mxu0  ;;  %v2724_v37 = vld [vmem:[#allocation9] ss:$0 sm:$0xff] }
0x148d   :  { %v2160_v26 = vadd.f32 %v3892_v61, %v2157_v23  ;;  %v2253_v43 = vpop.f32.mrb[22].mxu1 }
0x148e   :  { %v2257_v27 = vadd.f32 %v2253_v43, %v253_v25  ;;  %v3125_v28 = vpop.f32.mrb[23].mxu1 }
0x148f   :  { %3440 = vtanh.f32 %v2160_v26  ;;  %v2718_v31 = vmul.f32 -1.442695, %v2160_v26 }
0x1490   :  { %3442 = vtanh.f32 %v2257_v27  ;;  %v2720_v32 = vmul.f32 -1.442695, %v2257_v27 }
0x1491   :  { %3444 = vpow2.f32 %v2718_v31 }
0x1492   :  { %3446 = vpow2.f32 %v2720_v32 }
0x1499   :  { %v3441_v44 = vpop.eup %3440 }
0x149a   :  { %v3443_v30 = vpop.eup %3442  ;;  %2170 = vrot.lane.b32.xlu0 %v3441_v44, %s3617_s29  ;;  %v2576_v44 = vld [vmem:[%s4209_s11] sm:$0xff] }
0x149b   :  { %2267 = vrot.lane.b32.xlu1 %v3443_v30, %s3617_s29  ;;  %v3445_v34 = vpop.eup %3444  ;;  %v2577_v30 = vld [vmem:[%s4209_s11 + $0x8] sm:$0xff] }
0x149c   :  { %v3447_v54 = vpop.eup %3446  ;;  %v2164_v56 = vadd.f32 1.0, %v3445_v34  ;;  %v3321_v31 = vpack.c.bf16 %v2577_v30, %v2576_v44 }
0x149d   :  { %v2261_v35 = vadd.f32 1.0, %v3447_v54 }
0x149e   :  { %3448 = vrcp.f32 %v2164_v56 }
0x149f   :  { %3450 = vrcp.f32 %v2261_v35  ;;  %v2726_v35 = vld [vmem:[#allocation11] ss:$0 sm:$0xff] }
0x14a8   :  { %v3449_v29 = vpop.eup %3448 }
0x14a9   :  { %v3451_v38 = vpop.eup %3450  ;;  %v2168_v42 = vmul.f32 %v3449_v29, %v4099_v10 }
0x14aa   :  { %v2265_v51 = vmul.f32 %v3451_v38, %v4103_v15 }
0x150c   :  { %v2171_v36 = vpop.permute.xlu0 %2170 }
0x150d   :  { %v2268_v39 = vpop.permute.xlu1 %2267  ;;  %v2173_v40 = vmul.f32 %v3449_v29, %v2171_v36  ;;  %v2727_v36 = vld [vmem:[%s4208_s10] ss:$0 sm:$0xff] }
0x150e   :  { %v2270_v41 = vmul.f32 %v3451_v38, %v2268_v39 }
0x150f   :  { %2175 = vrot.lane.b32.xlu0 %v2173_v40, %s3618_s30 }
0x1510   :  { %2272 = vrot.lane.b32.xlu1 %v2270_v41, %s3618_s30 }
0x1581   :  { %v2176_v45 = vpop.permute.xlu0 %2175 }
0x1582   :  { %v2273_v46 = vpop.permute.xlu1 %2272  ;;  %v2178_v47 = vadd.f32 %v2176_v45, %v2168_v42  ;;  %v2728_v42 = vld [vmem:[%s4210_s12] ss:$0 sm:$0xff] }
0x1583   :  { %v2275_v48 = vadd.f32 %v2273_v46, %v2265_v51 }
0x1584   :  { %3452 = vtanh.f32 %v2178_v47 }
0x1585   :  { %3454 = vtanh.f32 %v2275_v48 }
0x158e   :  { %v3453_v49 = vpop.eup %3452 }
0x158f   :  { %v3455_v50 = vpop.eup %3454  ;;  %2181 = vrot.lane.b32.xlu0 %v3453_v49, %s3617_s29 }
0x1590   :  { %2278 = vrot.lane.b32.xlu1 %v3455_v50, %s3617_s29 }
0x1601   :  { %v2182_v55 = vpop.permute.xlu0 %2181 }
0x1602   :  { %v2279_v57 = vpop.permute.xlu1 %2278  ;;  %v2184_v59 = vmul.f32 %v3449_v29, %v2182_v55 }
0x1603   :  { %v2281_v60 = vmul.f32 %v3451_v38, %v2279_v57 }
0x1604   :  { %2283 = vrot.lane.b32.xlu0 %v2184_v59, %s3618_s30 }
0x1605   :  { %2358 = vrot.lane.b32.xlu1 %v2281_v60, %s3618_s30 }
0x1676   :  { %v2284_v62 = vpop.permute.xlu0 %2283 }
0x1677   :  { %v2359_v63 = vpop.permute.xlu1 %2358  ;;  %3135 = vmatmul.mubr.msk.f32.vlgmr.msra.gmra.mrb[28].mxu0 %vm284_vm2, %v2284_v62 }
0x1678   :  { %3146 = vmatmul.mubr.msk.f32.vlgmr.msra.gmra.mrb[24].mxu1 %vm284_vm2, %v2359_v63  ;;  %3156 = vmatprep.mubr.msk.f32.mxu0 %vm3615_vm0, %v3616_v1 }
0x1679   :  { %3163 = vmatprep.mubr.msk.f32.mxu1 %vm3615_vm0, %v3616_v1  ;;  %3322 = vmatpush3.bf16.msra.mxu1 %v3321_v31 }
0x174a   :  { %v2353_v2 = vpop.f32.mrb[28].mxu0 }
0x174b   :  { %v2428_v3 = vpop.f32.mrb[24].mxu1  ;;  %v3136_v13 = vpop.f32.mrb[29].mxu0 }
0x174c   :  { %v2429_v58 = vadd.f32 %v2428_v3, %v2353_v2  ;;  %v3147_v4 = vpop.f32.mrb[25].mxu1 }
0x174e   :  { %v2432_v52 = vadd.f32 %v3892_v61, %v2429_v58  ;;  %v2457_v61 = vld [vmem:[%s4205_s7] sm:$0xff] }
0x174f   :  { %v3315_v18 = vpack.c.bf16 %v2458_v17, %v2457_v61 }
0x1750   :  { %3456 = vtanh.f32 %v2432_v52  ;;  %v2723_v6 = vmul.f32 -1.442695, %v2432_v52 }
0x1751   :  { %3316 = vmatpush3.bf16.msra.mxu0 %v3315_v18 }
0x1752   :  { %3458 = vpow2.f32 %v2723_v6  ;;  %3317 = vmatprep.subr.bf16.mxu0 %v3614_v0 }
0x1755   :  { %3319 = vmatpush3.bf16.msra.mxu0 %v3318_v20 }
0x175a   :  { %v3457_v5 = vpop.eup %3456 }
0x175b   :  { %2442 = vrot.lane.b32.xlu0 %v3457_v5, %s3617_s29 }
0x175c   :  { %v3459_v7 = vpop.eup %3458 }
0x175d   :  { %v2436_v9 = vadd.f32 1.0, %v3459_v7 }
0x175f   :  { %3460 = vrcp.f32 %v2436_v9 }
0x1769   :  { %v3461_v10 = vpop.eup %3460 }
0x176a   :  { %v2440_v1 = vmul.f32 %v3461_v10, %v2178_v47 }
0x17cd   :  { %v2443_v11 = vpop.permute.xlu0 %2442 }
0x17ce   :  { %v2445_v14 = vmul.f32 %v3461_v10, %v2443_v11 }
0x17d0   :  { %2447 = vrot.lane.b32.xlu1 %v2445_v14, %s3618_s30 }
0x1842   :  { %v2448_v15 = vpop.permute.xlu1 %2447 }
0x1843   :  { %v2450_v16 = vadd.f32 %v2448_v15, %v2440_v1 }
0x1845   :  { %3462 = vtanh.f32 %v2450_v16 }
0x184f   :  { %v3463_v21 = vpop.eup %3462 }
0x1850   :  { %2453 = vrot.lane.b32.xlu0 %v3463_v21, %s3617_s29 }
0x18c2   :  { %v2454_v22 = vpop.permute.xlu0 %2453 }
0x18c3   :  { %v2456_v8 = vmul.f32 %v3461_v10, %v2454_v22 }
0x18c5   :  { %2469 = vrot.lane.b32.xlu1 %v2456_v8, %s3618_s30 }
0x1937   :  { %v2470_v12 = vpop.permute.xlu1 %2469 }
0x1938   :  { %3157 = vmatmul.mubr.msk.f32.vlgmr.msra.gmra.mrb[30].mxu0 %vm284_vm2, %v2470_v12 }
0x1a0b   :  { %v2539_v23 = vpop.f32.mrb[30].mxu0 }
0x1a0c   :  { %v2540_v24 = vadd.f32 %v2724_v37, %v2539_v23  ;;  %v3158_v33 = vpop.f32.mrb[31].mxu0 }
0x1a0e   :  { %v2543_v25 = vsel %vm126_vm1, %v2540_v24, 0.0 }
0x1a0f   :  { %2544 = vadd.xlane.f32.xlu0 %v2543_v25 }
0x1a9c   :  { %v2545_v26 = vpop.xlane.xlu0 %2544 }
0x1a9d   :  { %v2547_v0 = vmul.f32 0.0625, %v2545_v26 }
0x1a9f   :  { %v2548_v43 = vsub.f32 %v2540_v24, %v2547_v0 }
0x1aa1   :  { %v2549_v27 = vmul.f32 %v2548_v43, %v2548_v43 }
0x1aa3   :  { %v2550_v28 = vsel %vm126_vm1, %v2549_v27, 0.0 }
0x1aa4   :  { %2551 = vadd.xlane.f32.xlu1 %v2550_v28 }
0x1b31   :  { %v2552_v32 = vpop.xlane.xlu1 %2551 }
0x1b32   :  { %v2553_v34 = vmul.f32 0.0625, %v2552_v32 }
0x1b34   :  { %v2554_v54 = vadd.f32 1e-05, %v2553_v34 }
0x1b36   :  { %3464 = vrsqrt.f32 %v2554_v54 }
0x1b40   :  { %v3465_v56 = vpop.eup %3464 }
0x1b41   :  { %v2556_v29 = vmul.f32 %v3465_v56, %v2548_v43 }
0x1b43   :  { %v2564_v38 = vmul.f32 %v2726_v35, %v2556_v29 }
0x1b45   :  { %v2572_v39 = vadd.f32 %v2727_v36, %v2564_v38 }
0x1b47   :  { %vm2573_vm3 = vcmp.gt.f32.partialorder %v2572_v39, 0.0  ;;  %v2574_v40 = vmul.f32 0.2, %v2572_v39 }
0x1b49   :  { %v2575_v41 = vsel %vm2573_vm3, %v2572_v39, %v2574_v40 }
0x1b4a   :  { %3164 = vmatmul.mubr.msk.f32.vlgmr.msra.gmra.mrb[26].mxu1 %vm126_vm1, %v2575_v41 }
0x1c1d   :  { %v2654_v51 = vpop.f32.mrb[26].mxu1 }
0x1c1e   :  { %v2655_v45 = vadd.f32 %v2728_v42, %v2654_v51  ;;  %v3165_v46 = vpop.f32.mrb[27].mxu1 }
0x1c20   :  { %2658 = vst [vmem:[#allocation12] sm:$0xff] %v2655_v45 }
0x1c21   :  { %3588 = shalt.err (!%p3585_p2)
}
0x1c22   :  { %s3589_s16 = scalar_lea.hbm %s4211_s13, 128 }
0x1c23   :  { %p3590_p3 = scmp.ne.s32.totalorder %s4211_s13, %s3589_s16  ;;  %p3593_p4 = scmp.lt.u32.totalorder %s3589_s16, %s4211_s13 }
0x1c25   :  { %p3595_p5 = pnand %p3593_p4, %p3590_p3 }
0x1c27   :  { %3598 = shalt.err (!%p3595_p5)
}
0x1c28   :  { %2668 = dma.vmem_to_hbm [thread:$0]  %s2666_s15, 128, %s4211_s13, [#allocation5]  }
0x1c29   :  { %3605 = dma.done.wait [#allocation5], 128  }
0x1c2a   :  { %3606 = vsyncadd [#allocation5], 4294967168 }
0x1c2b   :  { %2672 = vsyncpa [#allocation4], 1 }
0x1c2c   :  { %2673 = vsyncpa [#allocation7], 1 }
0x1c2d   :  { %2674 = vsyncpa [#allocation10], 1 }
0x1c2e   :  { %2675 = vsyncpa [#allocation5], 1 }

</bundles_post_ra>
